<compile_context>
chip_gen: v7x
topology: tpu7x:2x2x1
jax: 0.10.0
libtpu: 0.0.40
codegen_flags: <defaults>
</compile_context>

<pallas_src>
import functools

import jax
import jax.numpy as jnp
from jax.experimental import pallas as pl
from jax.experimental.pallas import tpu as pltpu


def _round_up(n, m):
    return ((n + m - 1) // m) * m


def _pad_to(a, shape):
    return jnp.pad(a, [(0, s - d) for d, s in zip(a.shape, shape)])


def gnode_kernel(h0_ref, xz_ref, xh_ref, whf_ref, w2_ref, b2_ref,
                 hseq_ref, hlast_ref, *, hp, t_block, seq_len, needs_mask):
    """One grid step == T_BLOCK time steps of the recurrence (axis 'arbitrary')."""
    blk = pl.program_id(0)

    # h_last has a constant out-index -> resident in VMEM across the sequential
    # grid; it doubles as the carried hidden state (no scratch needed).
    @pl.when(blk == 0)
    def _():
        hlast_ref[...] = h0_ref[...]

    h = hlast_ref[...]          # [Bp, Hp]
    whf = whf_ref[...]          # [Hp, Hp+Lp]  fused (W_zr_h | W_1_h), hoisted
    w2 = w2_ref[...]            # [Lp, Hp]
    b2 = b2_ref[...]            # [Bp, Hp]     bias pre-broadcast in the wrapper

    for j in range(t_block):    # statically unrolled inner time loop
        pre = jnp.dot(h, whf, preferred_element_type=jnp.float32)
        # xz/xh already contain x_t @ W_*_x + bias (precomputed outside).
        z = jax.nn.sigmoid(pre[:, :hp] + xz_ref[j])
        hc = jnp.maximum(pre[:, hp:] + xh_ref[j], 0.0)
        hc = jnp.dot(hc, w2, preferred_element_type=jnp.float32) + b2
        hc = jnp.tanh(jnp.maximum(hc, 0.0))
        h_new = (1.0 - z) * h + z * hc
        if needs_mask:          # only traced when seq_len % t_block != 0
            valid = (blk * t_block + j) < seq_len
            h_new = jnp.where(valid, h_new, h)
        hseq_ref[j] = h_new
        h = h_new

    hlast_ref[...] = h


def gnode_forward(x, h_prev, params, t_block=8):
    """
    x:      [seq_len, batch, input_size]  float32
    h_prev: [1, batch, hidden]            float32
    returns (h_seq [seq_len, batch, hidden], h_last [1, batch, hidden])
    """
    seq_len, batch, input_size = x.shape
    hidden = h_prev.shape[-1]
    layer = params["w_1"].shape[0]

    # nn.Linear stores weight as [out, in]; pre-transpose to [in, out] and split
    # the (input_size + hidden) input dimension into x-part and h-part.
    wzr_t = params["w_zr"].T                      # [input+hidden, hidden]
    wzr_x, wzr_h = wzr_t[:input_size], wzr_t[input_size:]
    w1_t = params["w_1"].T                        # [input+hidden, layer]
    w1_x, w1_h = w1_t[:input_size], w1_t[input_size:]
    w2_t = params["w_2"].T                        # [layer, hidden]

    # Hoist the time-independent x-projections (one big matmul each, done by
    # XLA outside the recurrence); fold the W_zr / W_1 biases in as well.
    xz = jnp.einsum("sbi,ih->sbh", x, wzr_x) + params["b_zr"]   # [S, B, H]
    xh = jnp.einsum("sbi,il->sbl", x, w1_x) + params["b_1"]     # [S, B, L]

    # Pad to TPU-friendly shapes: batch -> sublane mult of 8, hidden/layer ->
    # lane mult of 128, seq -> multiple of the time block.
    bp = _round_up(max(batch, 8), 8)
    hp = _round_up(hidden, 128)
    lp = _round_up(layer, 128)
    t_block = max(1, min(t_block, seq_len))
    s_pad = _round_up(seq_len, t_block)
    needs_mask = s_pad != seq_len

    xz_p = _pad_to(xz, (s_pad, bp, hp))
    xh_p = _pad_to(xh, (s_pad, bp, lp))
    h0_p = _pad_to(h_prev[0], (bp, hp))

    # Fuse the two h-side weights into one [Hp, Hp+Lp] matrix (zero-padded rows
    # make padded h columns harmless). Single MXU push per step for the h path.
    whf = jnp.zeros((hp, hp + lp), jnp.float32)
    whf = whf.at[:hidden, :hidden].set(wzr_h)
    whf = whf.at[:hidden, hp:hp + layer].set(w1_h)
    w2_p = _pad_to(w2_t, (lp, hp))
    b2_p = _pad_to(jnp.broadcast_to(params["b_2"][None, :], (bp, hidden)),
                   (bp, hp))

    grid = (s_pad // t_block,)
    kernel = functools.partial(gnode_kernel, hp=hp, t_block=t_block,
                               seq_len=seq_len, needs_mask=needs_mask)

    grid_spec = pltpu.PrefetchScalarGridSpec(
        num_scalar_prefetch=0,
        grid=grid,
        in_specs=[
            pl.BlockSpec((bp, hp), lambda b: (0, 0)),               # h0
            pl.BlockSpec((t_block, bp, hp), lambda b: (b, 0, 0)),   # xz blocks
            pl.BlockSpec((t_block, bp, lp), lambda b: (b, 0, 0)),   # xh blocks
            pl.BlockSpec((hp, hp + lp), lambda b: (0, 0)),          # fused W_h
            pl.BlockSpec((lp, hp), lambda b: (0, 0)),               # W_2
            pl.BlockSpec((bp, hp), lambda b: (0, 0)),               # b_2
        ],
        out_specs=[
            pl.BlockSpec((t_block, bp, hp), lambda b: (b, 0, 0)),   # h_seq
            pl.BlockSpec((bp, hp), lambda b: (0, 0)),               # h_last
        ],
    )

    h_seq_p, h_last_p = pl.pallas_call(
        kernel,
        out_shape=(
            jax.ShapeDtypeStruct((s_pad, bp, hp), jnp.float32),
            jax.ShapeDtypeStruct((bp, hp), jnp.float32),
        ),
        grid_spec=grid_spec,
        compiler_params=pltpu.CompilerParams(
            dimension_semantics=("arbitrary",)),    # sequential recurrence
    )(h0_p, xz_p, xh_p, whf, w2_p, b2_p)

    h_seq = h_seq_p[:seq_len, :batch, :hidden]
    h_last = h_last_p[:batch, :hidden][None]
    return h_seq, h_last


def gnode_reference(x, h_prev, params):
    """Pure-JAX reference matching the PyTorch forward exactly."""
    seq_len = x.shape[0]
    h_t = h_prev[0]
    hs = []
    for t in range(seq_len):
        x_t = x[t]
        combined = jnp.concatenate([x_t, h_t], axis=-1)
        z = jax.nn.sigmoid(combined @ params["w_zr"].T + params["b_zr"])
        hc = jnp.maximum(combined @ params["w_1"].T + params["b_1"], 0.0)
        hc = jnp.maximum(hc @ params["w_2"].T + params["b_2"], 0.0)
        hc = jnp.tanh(hc)
        h_t = (1.0 - z) * h_t + z * hc
        hs.append(h_t)
    return jnp.stack(hs, axis=0), h_t[None]


def init_params(key, input_size, hidden_size, layer_size):
    """Deterministic init mimicking nn.Linear's uniform(-1/sqrt(fan_in), ...)."""
    ks = jax.random.split(key, 6)
    def u(k, shape, fan_in):
        bound = 1.0 / jnp.sqrt(fan_in)
        return jax.random.uniform(k, shape, jnp.float32, -bound, bound)
    ih = input_size + hidden_size
    return {
        "w_zr": u(ks[0], (hidden_size, ih), ih),
        "b_zr": u(ks[1], (hidden_size,), ih),
        "w_1":  u(ks[2], (layer_size, ih), ih),
        "b_1":  u(ks[3], (layer_size,), ih),
        "w_2":  u(ks[4], (hidden_size, layer_size), layer_size),
        "b_2":  u(ks[5], (hidden_size,), layer_size),
    }


if __name__ == "__main__":
    seq_len, batch, input_size, hidden_size, layer_size = 8, 2, 4, 32, 64

    key = jax.random.PRNGKey(0)
    k_x, k_h, k_p = jax.random.split(key, 3)
    x = jax.random.normal(k_x, (seq_len, batch, input_size), jnp.float32)
    h_prev = jax.random.normal(k_h, (1, batch, hidden_size), jnp.float32)
    params = init_params(k_p, input_size, hidden_size, layer_size)

    h_seq, h_last = gnode_forward(x, h_prev, params)
    jax.block_until_ready((h_seq, h_last))

    h_seq_ref, h_last_ref = gnode_reference(x, h_prev, params)
    assert h_seq.shape == (seq_len, batch, hidden_size)
    assert h_last.shape == (1, batch, hidden_size)
    assert jnp.allclose(h_seq, h_seq_ref, atol=1e-5, rtol=1e-5)
    assert jnp.allclose(h_last, h_last_ref, atol=1e-5, rtol=1e-5)

    print("KERNEL_OK")
</pallas_src>

<mosaic_0001>
module attributes {stable_mosaic.version = 11 : i64} {
  func.func @gnode_kernel(%arg0: i32, %arg1: memref<8x128xf32, #tpu.memory_space<vmem>>, %arg2: memref<8x8x128xf32, #tpu.memory_space<vmem>>, %arg3: memref<8x8x128xf32, #tpu.memory_space<vmem>>, %arg4: memref<128x256xf32, #tpu.memory_space<vmem>>, %arg5: memref<128x128xf32, #tpu.memory_space<vmem>>, %arg6: memref<8x128xf32, #tpu.memory_space<vmem>>, %arg7: memref<8x8x128xf32, #tpu.memory_space<vmem>>, %arg8: memref<8x128xf32, #tpu.memory_space<vmem>>) attributes {dimension_semantics = [#tpu.dimension_semantics<arbitrary>], iteration_bounds = array<i64: 1>, scalar_prefetch = 0 : i64, scratch_operands = 0 : i64, tpu.core_type = #tpu.core_type<tc>, window_params = [{pipeline_mode = #tpu.pipeline_mode<synchronous>, transform_indices = @transform_0, window_bounds = array<i64: 8, 128>}, {transform_indices = @transform_1, window_bounds = array<i64: 8, 8, 128>}, {transform_indices = @transform_2, window_bounds = array<i64: 8, 8, 128>}, {pipeline_mode = #tpu.pipeline_mode<synchronous>, transform_indices = @transform_3, window_bounds = array<i64: 128, 256>}, {pipeline_mode = #tpu.pipeline_mode<synchronous>, transform_indices = @transform_4, window_bounds = array<i64: 128, 128>}, {pipeline_mode = #tpu.pipeline_mode<synchronous>, transform_indices = @transform_5, window_bounds = array<i64: 8, 128>}, {transform_indices = @transform_6, window_bounds = array<i64: 8, 8, 128>}, {pipeline_mode = #tpu.pipeline_mode<synchronous>, transform_indices = @transform_7, window_bounds = array<i64: 8, 128>}]} {
    %c0_i32 = arith.constant 0 : i32
    %0 = arith.cmpi eq, %arg0, %c0_i32 : i32
    %1 = arith.extui %0 : i1 to i32
    %c0_i32_0 = arith.constant 0 : i32
    %2 = arith.cmpi ne, %1, %c0_i32_0 : i32
    scf.if %2 {
      %c0_122 = arith.constant 0 : index
      %c0_123 = arith.constant 0 : index
      %240 = vector.load %arg1[%c0_122, %c0_123] : memref<8x128xf32, #tpu.memory_space<vmem>>, vector<8x128xf32>
      %c0_124 = arith.constant 0 : index
      %c0_125 = arith.constant 0 : index
      %241 = vector.load %arg8[%c0_124, %c0_125] : memref<8x128xf32, #tpu.memory_space<vmem>>, vector<8x128xf32>
      tpu.vector_store %arg8[%c0_124, %c0_125], %240 {strides = array<i32>} : memref<8x128xf32, #tpu.memory_space<vmem>>, vector<8x128xf32>,
    } else {
    }
    %c0 = arith.constant 0 : index
    %c0_1 = arith.constant 0 : index
    %3 = vector.load %arg8[%c0, %c0_1] : memref<8x128xf32, #tpu.memory_space<vmem>>, vector<8x128xf32>
    %c0_2 = arith.constant 0 : index
    %c0_3 = arith.constant 0 : index
    %4 = vector.load %arg4[%c0_2, %c0_3] : memref<128x256xf32, #tpu.memory_space<vmem>>, vector<128x256xf32>
    %c0_4 = arith.constant 0 : index
    %c0_5 = arith.constant 0 : index
    %5 = vector.load %arg5[%c0_4, %c0_5] : memref<128x128xf32, #tpu.memory_space<vmem>>, vector<128x128xf32>
    %c0_6 = arith.constant 0 : index
    %c0_7 = arith.constant 0 : index
    %6 = vector.load %arg6[%c0_6, %c0_7] : memref<8x128xf32, #tpu.memory_space<vmem>>, vector<8x128xf32>
    %cst = arith.constant dense<0.000000e+00> : vector<8x256xf32>
    %7 = tpu.matmul %3, %4, %cst {dimension_numbers = #tpu.dot_dimension_numbers<[1], [0], [0], [1], [0, 0, 1, 1], [], []>} : vector<8x128xf32>, vector<128x256xf32>, vector<8x256xf32> -> vector<8x256xf32>
    %8 = vector.extract_strided_slice %7 {offsets = [0, 0], sizes = [8, 128], strides = [1, 1]} : vector<8x256xf32> to vector<8x128xf32>
    %c0_8 = arith.constant 0 : index
    %c0_9 = arith.constant 0 : index
    %c0_10 = arith.constant 0 : index
    %9 = vector.load %arg2[%c0_8, %c0_9, %c0_10] : memref<8x8x128xf32, #tpu.memory_space<vmem>>, vector<1x8x128xf32>
    %10 = vector.shape_cast %9 : vector<1x8x128xf32> to vector<8x128xf32>
    %11 = arith.addf %8, %10 : vector<8x128xf32>
    %12 = arith.negf %11 : vector<8x128xf32>
    %13 = math.exp %12 : vector<8x128xf32>
    %cst_11 = arith.constant 1.000000e+00 : f32
    %14 = vector.broadcast %cst_11 : f32 to vector<8x128xf32>
    %15 = arith.addf %14, %13 : vector<8x128xf32>
    %16 = arith.divf %14, %15 : vector<8x128xf32>
    %17 = vector.extract_strided_slice %7 {offsets = [0, 128], sizes = [8, 128], strides = [1, 1]} : vector<8x256xf32> to vector<8x128xf32>
    %c0_12 = arith.constant 0 : index
    %c0_13 = arith.constant 0 : index
    %c0_14 = arith.constant 0 : index
    %18 = vector.load %arg3[%c0_12, %c0_13, %c0_14] : memref<8x8x128xf32, #tpu.memory_space<vmem>>, vector<1x8x128xf32>
    %19 = vector.shape_cast %18 : vector<1x8x128xf32> to vector<8x128xf32>
    %20 = arith.addf %17, %19 : vector<8x128xf32>
    %cst_15 = arith.constant 0.000000e+00 : f32
    %21 = vector.broadcast %cst_15 : f32 to vector<8x128xf32>
    %22 = arith.maximumf %20, %21 : vector<8x128xf32>
    %cst_16 = arith.constant dense<0.000000e+00> : vector<8x128xf32>
    %23 = tpu.matmul %22, %5, %cst_16 {dimension_numbers = #tpu.dot_dimension_numbers<[1], [0], [0], [1], [0, 0, 1, 1], [], []>} : vector<8x128xf32>, vector<128x128xf32>, vector<8x128xf32> -> vector<8x128xf32>
    %24 = arith.addf %23, %6 : vector<8x128xf32>
    %cst_17 = arith.constant 0.000000e+00 : f32
    %25 = vector.broadcast %cst_17 : f32 to vector<8x128xf32>
    %26 = arith.maximumf %24, %25 : vector<8x128xf32>
    %27 = math.tanh %26 : vector<8x128xf32>
    %cst_18 = arith.constant 1.000000e+00 : f32
    %28 = vector.broadcast %cst_18 : f32 to vector<8x128xf32>
    %29 = arith.subf %28, %16 : vector<8x128xf32>
    %30 = arith.mulf %29, %3 : vector<8x128xf32>
    %31 = arith.mulf %16, %27 : vector<8x128xf32>
    %32 = arith.addf %30, %31 : vector<8x128xf32>
    %c0_19 = arith.constant 0 : index
    %c0_20 = arith.constant 0 : index
    %c0_21 = arith.constant 0 : index
    %33 = vector.load %arg7[%c0_19, %c0_20, %c0_21] : memref<8x8x128xf32, #tpu.memory_space<vmem>>, vector<1x8x128xf32>
    %34 = vector.shape_cast %33 : vector<1x8x128xf32> to vector<8x128xf32>
    %35 = vector.shape_cast %32 : vector<8x128xf32> to vector<1x8x128xf32>
    tpu.vector_store %arg7[%c0_19, %c0_20, %c0_21], %35 {strides = array<i32>} : memref<8x8x128xf32, #tpu.memory_space<vmem>>, vector<1x8x128xf32>,
    %cst_22 = arith.constant dense<0.000000e+00> : vector<8x256xf32>
    %36 = tpu.matmul %32, %4, %cst_22 {dimension_numbers = #tpu.dot_dimension_numbers<[1], [0], [0], [1], [0, 0, 1, 1], [], []>} : vector<8x128xf32>, vector<128x256xf32>, vector<8x256xf32> -> vector<8x256xf32>
    %37 = vector.extract_strided_slice %36 {offsets = [0, 0], sizes = [8, 128], strides = [1, 1]} : vector<8x256xf32> to vector<8x128xf32>
    %c1 = arith.constant 1 : index
    %c0_23 = arith.constant 0 : index
    %c0_24 = arith.constant 0 : index
    %38 = vector.load %arg2[%c1, %c0_23, %c0_24] : memref<8x8x128xf32, #tpu.memory_space<vmem>>, vector<1x8x128xf32>
    %39 = vector.shape_cast %38 : vector<1x8x128xf32> to vector<8x128xf32>
    %40 = arith.addf %37, %39 : vector<8x128xf32>
    %41 = arith.negf %40 : vector<8x128xf32>
    %42 = math.exp %41 : vector<8x128xf32>
    %cst_25 = arith.constant 1.000000e+00 : f32
    %43 = vector.broadcast %cst_25 : f32 to vector<8x128xf32>
    %44 = arith.addf %43, %42 : vector<8x128xf32>
    %45 = arith.divf %43, %44 : vector<8x128xf32>
    %46 = vector.extract_strided_slice %36 {offsets = [0, 128], sizes = [8, 128], strides = [1, 1]} : vector<8x256xf32> to vector<8x128xf32>
    %c1_26 = arith.constant 1 : index
    %c0_27 = arith.constant 0 : index
    %c0_28 = arith.constant 0 : index
    %47 = vector.load %arg3[%c1_26, %c0_27, %c0_28] : memref<8x8x128xf32, #tpu.memory_space<vmem>>, vector<1x8x128xf32>
    %48 = vector.shape_cast %47 : vector<1x8x128xf32> to vector<8x128xf32>
    %49 = arith.addf %46, %48 : vector<8x128xf32>
    %cst_29 = arith.constant 0.000000e+00 : f32
    %50 = vector.broadcast %cst_29 : f32 to vector<8x128xf32>
    %51 = arith.maximumf %49, %50 : vector<8x128xf32>
    %cst_30 = arith.constant dense<0.000000e+00> : vector<8x128xf32>
    %52 = tpu.matmul %51, %5, %cst_30 {dimension_numbers = #tpu.dot_dimension_numbers<[1], [0], [0], [1], [0, 0, 1, 1], [], []>} : vector<8x128xf32>, vector<128x128xf32>, vector<8x128xf32> -> vector<8x128xf32>
    %53 = arith.addf %52, %6 : vector<8x128xf32>
    %cst_31 = arith.constant 0.000000e+00 : f32
    %54 = vector.broadcast %cst_31 : f32 to vector<8x128xf32>
    %55 = arith.maximumf %53, %54 : vector<8x128xf32>
    %56 = math.tanh %55 : vector<8x128xf32>
    %cst_32 = arith.constant 1.000000e+00 : f32
    %57 = vector.broadcast %cst_32 : f32 to vector<8x128xf32>
    %58 = arith.subf %57, %45 : vector<8x128xf32>
    %59 = arith.mulf %58, %32 : vector<8x128xf32>
    %60 = arith.mulf %45, %56 : vector<8x128xf32>
    %61 = arith.addf %59, %60 : vector<8x128xf32>
    %c1_33 = arith.constant 1 : index
    %c0_34 = arith.constant 0 : index
    %c0_35 = arith.constant 0 : index
    %62 = vector.load %arg7[%c1_33, %c0_34, %c0_35] : memref<8x8x128xf32, #tpu.memory_space<vmem>>, vector<1x8x128xf32>
    %63 = vector.shape_cast %62 : vector<1x8x128xf32> to vector<8x128xf32>
    %64 = vector.shape_cast %61 : vector<8x128xf32> to vector<1x8x128xf32>
    tpu.vector_store %arg7[%c1_33, %c0_34, %c0_35], %64 {strides = array<i32>} : memref<8x8x128xf32, #tpu.memory_space<vmem>>, vector<1x8x128xf32>,
    %cst_36 = arith.constant dense<0.000000e+00> : vector<8x256xf32>
    %65 = tpu.matmul %61, %4, %cst_36 {dimension_numbers = #tpu.dot_dimension_numbers<[1], [0], [0], [1], [0, 0, 1, 1], [], []>} : vector<8x128xf32>, vector<128x256xf32>, vector<8x256xf32> -> vector<8x256xf32>
    %66 = vector.extract_strided_slice %65 {offsets = [0, 0], sizes = [8, 128], strides = [1, 1]} : vector<8x256xf32> to vector<8x128xf32>
    %c2 = arith.constant 2 : index
    %c0_37 = arith.constant 0 : index
    %c0_38 = arith.constant 0 : index
    %67 = vector.load %arg2[%c2, %c0_37, %c0_38] : memref<8x8x128xf32, #tpu.memory_space<vmem>>, vector<1x8x128xf32>
    %68 = vector.shape_cast %67 : vector<1x8x128xf32> to vector<8x128xf32>
    %69 = arith.addf %66, %68 : vector<8x128xf32>
    %70 = arith.negf %69 : vector<8x128xf32>
    %71 = math.exp %70 : vector<8x128xf32>
    %cst_39 = arith.constant 1.000000e+00 : f32
    %72 = vector.broadcast %cst_39 : f32 to vector<8x128xf32>
    %73 = arith.addf %72, %71 : vector<8x128xf32>
    %74 = arith.divf %72, %73 : vector<8x128xf32>
    %75 = vector.extract_strided_slice %65 {offsets = [0, 128], sizes = [8, 128], strides = [1, 1]} : vector<8x256xf32> to vector<8x128xf32>
    %c2_40 = arith.constant 2 : index
    %c0_41 = arith.constant 0 : index
    %c0_42 = arith.constant 0 : index
    %76 = vector.load %arg3[%c2_40, %c0_41, %c0_42] : memref<8x8x128xf32, #tpu.memory_space<vmem>>, vector<1x8x128xf32>
    %77 = vector.shape_cast %76 : vector<1x8x128xf32> to vector<8x128xf32>
    %78 = arith.addf %75, %77 : vector<8x128xf32>
    %cst_43 = arith.constant 0.000000e+00 : f32
    %79 = vector.broadcast %cst_43 : f32 to vector<8x128xf32>
    %80 = arith.maximumf %78, %79 : vector<8x128xf32>
    %cst_44 = arith.constant dense<0.000000e+00> : vector<8x128xf32>
    %81 = tpu.matmul %80, %5, %cst_44 {dimension_numbers = #tpu.dot_dimension_numbers<[1], [0], [0], [1], [0, 0, 1, 1], [], []>} : vector<8x128xf32>, vector<128x128xf32>, vector<8x128xf32> -> vector<8x128xf32>
    %82 = arith.addf %81, %6 : vector<8x128xf32>
    %cst_45 = arith.constant 0.000000e+00 : f32
    %83 = vector.broadcast %cst_45 : f32 to vector<8x128xf32>
    %84 = arith.maximumf %82, %83 : vector<8x128xf32>
    %85 = math.tanh %84 : vector<8x128xf32>
    %cst_46 = arith.constant 1.000000e+00 : f32
    %86 = vector.broadcast %cst_46 : f32 to vector<8x128xf32>
    %87 = arith.subf %86, %74 : vector<8x128xf32>
    %88 = arith.mulf %87, %61 : vector<8x128xf32>
    %89 = arith.mulf %74, %85 : vector<8x128xf32>
    %90 = arith.addf %88, %89 : vector<8x128xf32>
    %c2_47 = arith.constant 2 : index
    %c0_48 = arith.constant 0 : index
    %c0_49 = arith.constant 0 : index
    %91 = vector.load %arg7[%c2_47, %c0_48, %c0_49] : memref<8x8x128xf32, #tpu.memory_space<vmem>>, vector<1x8x128xf32>
    %92 = vector.shape_cast %91 : vector<1x8x128xf32> to vector<8x128xf32>
    %93 = vector.shape_cast %90 : vector<8x128xf32> to vector<1x8x128xf32>
    tpu.vector_store %arg7[%c2_47, %c0_48, %c0_49], %93 {strides = array<i32>} : memref<8x8x128xf32, #tpu.memory_space<vmem>>, vector<1x8x128xf32>,
    %cst_50 = arith.constant dense<0.000000e+00> : vector<8x256xf32>
    %94 = tpu.matmul %90, %4, %cst_50 {dimension_numbers = #tpu.dot_dimension_numbers<[1], [0], [0], [1], [0, 0, 1, 1], [], []>} : vector<8x128xf32>, vector<128x256xf32>, vector<8x256xf32> -> vector<8x256xf32>
    %95 = vector.extract_strided_slice %94 {offsets = [0, 0], sizes = [8, 128], strides = [1, 1]} : vector<8x256xf32> to vector<8x128xf32>
    %c3 = arith.constant 3 : index
    %c0_51 = arith.constant 0 : index
    %c0_52 = arith.constant 0 : index
    %96 = vector.load %arg2[%c3, %c0_51, %c0_52] : memref<8x8x128xf32, #tpu.memory_space<vmem>>, vector<1x8x128xf32>
    %97 = vector.shape_cast %96 : vector<1x8x128xf32> to vector<8x128xf32>
    %98 = arith.addf %95, %97 : vector<8x128xf32>
    %99 = arith.negf %98 : vector<8x128xf32>
    %100 = math.exp %99 : vector<8x128xf32>
    %cst_53 = arith.constant 1.000000e+00 : f32
    %101 = vector.broadcast %cst_53 : f32 to vector<8x128xf32>
    %102 = arith.addf %101, %100 : vector<8x128xf32>
    %103 = arith.divf %101, %102 : vector<8x128xf32>
    %104 = vector.extract_strided_slice %94 {offsets = [0, 128], sizes = [8, 128], strides = [1, 1]} : vector<8x256xf32> to vector<8x128xf32>
    %c3_54 = arith.constant 3 : index
    %c0_55 = arith.constant 0 : index
    %c0_56 = arith.constant 0 : index
    %105 = vector.load %arg3[%c3_54, %c0_55, %c0_56] : memref<8x8x128xf32, #tpu.memory_space<vmem>>, vector<1x8x128xf32>
    %106 = vector.shape_cast %105 : vector<1x8x128xf32> to vector<8x128xf32>
    %107 = arith.addf %104, %106 : vector<8x128xf32>
    %cst_57 = arith.constant 0.000000e+00 : f32
    %108 = vector.broadcast %cst_57 : f32 to vector<8x128xf32>
    %109 = arith.maximumf %107, %108 : vector<8x128xf32>
    %cst_58 = arith.constant dense<0.000000e+00> : vector<8x128xf32>
    %110 = tpu.matmul %109, %5, %cst_58 {dimension_numbers = #tpu.dot_dimension_numbers<[1], [0], [0], [1], [0, 0, 1, 1], [], []>} : vector<8x128xf32>, vector<128x128xf32>, vector<8x128xf32> -> vector<8x128xf32>
    %111 = arith.addf %110, %6 : vector<8x128xf32>
    %cst_59 = arith.constant 0.000000e+00 : f32
    %112 = vector.broadcast %cst_59 : f32 to vector<8x128xf32>
    %113 = arith.maximumf %111, %112 : vector<8x128xf32>
    %114 = math.tanh %113 : vector<8x128xf32>
    %cst_60 = arith.constant 1.000000e+00 : f32
    %115 = vector.broadcast %cst_60 : f32 to vector<8x128xf32>
    %116 = arith.subf %115, %103 : vector<8x128xf32>
    %117 = arith.mulf %116, %90 : vector<8x128xf32>
    %118 = arith.mulf %103, %114 : vector<8x128xf32>
    %119 = arith.addf %117, %118 : vector<8x128xf32>
    %c3_61 = arith.constant 3 : index
    %c0_62 = arith.constant 0 : index
    %c0_63 = arith.constant 0 : index
    %120 = vector.load %arg7[%c3_61, %c0_62, %c0_63] : memref<8x8x128xf32, #tpu.memory_space<vmem>>, vector<1x8x128xf32>
    %121 = vector.shape_cast %120 : vector<1x8x128xf32> to vector<8x128xf32>
    %122 = vector.shape_cast %119 : vector<8x128xf32> to vector<1x8x128xf32>
    tpu.vector_store %arg7[%c3_61, %c0_62, %c0_63], %122 {strides = array<i32>} : memref<8x8x128xf32, #tpu.memory_space<vmem>>, vector<1x8x128xf32>,
    %cst_64 = arith.constant dense<0.000000e+00> : vector<8x256xf32>
    %123 = tpu.matmul %119, %4, %cst_64 {dimension_numbers = #tpu.dot_dimension_numbers<[1], [0], [0], [1], [0, 0, 1, 1], [], []>} : vector<8x128xf32>, vector<128x256xf32>, vector<8x256xf32> -> vector<8x256xf32>
    %124 = vector.extract_strided_slice %123 {offsets = [0, 0], sizes = [8, 128], strides = [1, 1]} : vector<8x256xf32> to vector<8x128xf32>
    %c4 = arith.constant 4 : index
    %c0_65 = arith.constant 0 : index
    %c0_66 = arith.constant 0 : index
    %125 = vector.load %arg2[%c4, %c0_65, %c0_66] : memref<8x8x128xf32, #tpu.memory_space<vmem>>, vector<1x8x128xf32>
    %126 = vector.shape_cast %125 : vector<1x8x128xf32> to vector<8x128xf32>
    %127 = arith.addf %124, %126 : vector<8x128xf32>
    %128 = arith.negf %127 : vector<8x128xf32>
    %129 = math.exp %128 : vector<8x128xf32>
    %cst_67 = arith.constant 1.000000e+00 : f32
    %130 = vector.broadcast %cst_67 : f32 to vector<8x128xf32>
    %131 = arith.addf %130, %129 : vector<8x128xf32>
    %132 = arith.divf %130, %131 : vector<8x128xf32>
    %133 = vector.extract_strided_slice %123 {offsets = [0, 128], sizes = [8, 128], strides = [1, 1]} : vector<8x256xf32> to vector<8x128xf32>
    %c4_68 = arith.constant 4 : index
    %c0_69 = arith.constant 0 : index
    %c0_70 = arith.constant 0 : index
    %134 = vector.load %arg3[%c4_68, %c0_69, %c0_70] : memref<8x8x128xf32, #tpu.memory_space<vmem>>, vector<1x8x128xf32>
    %135 = vector.shape_cast %134 : vector<1x8x128xf32> to vector<8x128xf32>
    %136 = arith.addf %133, %135 : vector<8x128xf32>
    %cst_71 = arith.constant 0.000000e+00 : f32
    %137 = vector.broadcast %cst_71 : f32 to vector<8x128xf32>
    %138 = arith.maximumf %136, %137 : vector<8x128xf32>
    %cst_72 = arith.constant dense<0.000000e+00> : vector<8x128xf32>
    %139 = tpu.matmul %138, %5, %cst_72 {dimension_numbers = #tpu.dot_dimension_numbers<[1], [0], [0], [1], [0, 0, 1, 1], [], []>} : vector<8x128xf32>, vector<128x128xf32>, vector<8x128xf32> -> vector<8x128xf32>
    %140 = arith.addf %139, %6 : vector<8x128xf32>
    %cst_73 = arith.constant 0.000000e+00 : f32
    %141 = vector.broadcast %cst_73 : f32 to vector<8x128xf32>
    %142 = arith.maximumf %140, %141 : vector<8x128xf32>
    %143 = math.tanh %142 : vector<8x128xf32>
    %cst_74 = arith.constant 1.000000e+00 : f32
    %144 = vector.broadcast %cst_74 : f32 to vector<8x128xf32>
    %145 = arith.subf %144, %132 : vector<8x128xf32>
    %146 = arith.mulf %145, %119 : vector<8x128xf32>
    %147 = arith.mulf %132, %143 : vector<8x128xf32>
    %148 = arith.addf %146, %147 : vector<8x128xf32>
    %c4_75 = arith.constant 4 : index
    %c0_76 = arith.constant 0 : index
    %c0_77 = arith.constant 0 : index
    %149 = vector.load %arg7[%c4_75, %c0_76, %c0_77] : memref<8x8x128xf32, #tpu.memory_space<vmem>>, vector<1x8x128xf32>
    %150 = vector.shape_cast %149 : vector<1x8x128xf32> to vector<8x128xf32>
    %151 = vector.shape_cast %148 : vector<8x128xf32> to vector<1x8x128xf32>
    tpu.vector_store %arg7[%c4_75, %c0_76, %c0_77], %151 {strides = array<i32>} : memref<8x8x128xf32, #tpu.memory_space<vmem>>, vector<1x8x128xf32>,
    %cst_78 = arith.constant dense<0.000000e+00> : vector<8x256xf32>
    %152 = tpu.matmul %148, %4, %cst_78 {dimension_numbers = #tpu.dot_dimension_numbers<[1], [0], [0], [1], [0, 0, 1, 1], [], []>} : vector<8x128xf32>, vector<128x256xf32>, vector<8x256xf32> -> vector<8x256xf32>
    %153 = vector.extract_strided_slice %152 {offsets = [0, 0], sizes = [8, 128], strides = [1, 1]} : vector<8x256xf32> to vector<8x128xf32>
    %c5 = arith.constant 5 : index
    %c0_79 = arith.constant 0 : index
    %c0_80 = arith.constant 0 : index
    %154 = vector.load %arg2[%c5, %c0_79, %c0_80] : memref<8x8x128xf32, #tpu.memory_space<vmem>>, vector<1x8x128xf32>
    %155 = vector.shape_cast %154 : vector<1x8x128xf32> to vector<8x128xf32>
    %156 = arith.addf %153, %155 : vector<8x128xf32>
    %157 = arith.negf %156 : vector<8x128xf32>
    %158 = math.exp %157 : vector<8x128xf32>
    %cst_81 = arith.constant 1.000000e+00 : f32
    %159 = vector.broadcast %cst_81 : f32 to vector<8x128xf32>
    %160 = arith.addf %159, %158 : vector<8x128xf32>
    %161 = arith.divf %159, %160 : vector<8x128xf32>
    %162 = vector.extract_strided_slice %152 {offsets = [0, 128], sizes = [8, 128], strides = [1, 1]} : vector<8x256xf32> to vector<8x128xf32>
    %c5_82 = arith.constant 5 : index
    %c0_83 = arith.constant 0 : index
    %c0_84 = arith.constant 0 : index
    %163 = vector.load %arg3[%c5_82, %c0_83, %c0_84] : memref<8x8x128xf32, #tpu.memory_space<vmem>>, vector<1x8x128xf32>
    %164 = vector.shape_cast %163 : vector<1x8x128xf32> to vector<8x128xf32>
    %165 = arith.addf %162, %164 : vector<8x128xf32>
    %cst_85 = arith.constant 0.000000e+00 : f32
    %166 = vector.broadcast %cst_85 : f32 to vector<8x128xf32>
    %167 = arith.maximumf %165, %166 : vector<8x128xf32>
    %cst_86 = arith.constant dense<0.000000e+00> : vector<8x128xf32>
    %168 = tpu.matmul %167, %5, %cst_86 {dimension_numbers = #tpu.dot_dimension_numbers<[1], [0], [0], [1], [0, 0, 1, 1], [], []>} : vector<8x128xf32>, vector<128x128xf32>, vector<8x128xf32> -> vector<8x128xf32>
    %169 = arith.addf %168, %6 : vector<8x128xf32>
    %cst_87 = arith.constant 0.000000e+00 : f32
    %170 = vector.broadcast %cst_87 : f32 to vector<8x128xf32>
    %171 = arith.maximumf %169, %170 : vector<8x128xf32>
    %172 = math.tanh %171 : vector<8x128xf32>
    %cst_88 = arith.constant 1.000000e+00 : f32
    %173 = vector.broadcast %cst_88 : f32 to vector<8x128xf32>
    %174 = arith.subf %173, %161 : vector<8x128xf32>
    %175 = arith.mulf %174, %148 : vector<8x128xf32>
    %176 = arith.mulf %161, %172 : vector<8x128xf32>
    %177 = arith.addf %175, %176 : vector<8x128xf32>
    %c5_89 = arith.constant 5 : index
    %c0_90 = arith.constant 0 : index
    %c0_91 = arith.constant 0 : index
    %178 = vector.load %arg7[%c5_89, %c0_90, %c0_91] : memref<8x8x128xf32, #tpu.memory_space<vmem>>, vector<1x8x128xf32>
    %179 = vector.shape_cast %178 : vector<1x8x128xf32> to vector<8x128xf32>
    %180 = vector.shape_cast %177 : vector<8x128xf32> to vector<1x8x128xf32>
    tpu.vector_store %arg7[%c5_89, %c0_90, %c0_91], %180 {strides = array<i32>} : memref<8x8x128xf32, #tpu.memory_space<vmem>>, vector<1x8x128xf32>,
    %cst_92 = arith.constant dense<0.000000e+00> : vector<8x256xf32>
    %181 = tpu.matmul %177, %4, %cst_92 {dimension_numbers = #tpu.dot_dimension_numbers<[1], [0], [0], [1], [0, 0, 1, 1], [], []>} : vector<8x128xf32>, vector<128x256xf32>, vector<8x256xf32> -> vector<8x256xf32>
    %182 = vector.extract_strided_slice %181 {offsets = [0, 0], sizes = [8, 128], strides = [1, 1]} : vector<8x256xf32> to vector<8x128xf32>
    %c6 = arith.constant 6 : index
    %c0_93 = arith.constant 0 : index
    %c0_94 = arith.constant 0 : index
    %183 = vector.load %arg2[%c6, %c0_93, %c0_94] : memref<8x8x128xf32, #tpu.memory_space<vmem>>, vector<1x8x128xf32>
    %184 = vector.shape_cast %183 : vector<1x8x128xf32> to vector<8x128xf32>
    %185 = arith.addf %182, %184 : vector<8x128xf32>
    %186 = arith.negf %185 : vector<8x128xf32>
    %187 = math.exp %186 : vector<8x128xf32>
    %cst_95 = arith.constant 1.000000e+00 : f32
    %188 = vector.broadcast %cst_95 : f32 to vector<8x128xf32>
    %189 = arith.addf %188, %187 : vector<8x128xf32>
    %190 = arith.divf %188, %189 : vector<8x128xf32>
    %191 = vector.extract_strided_slice %181 {offsets = [0, 128], sizes = [8, 128], strides = [1, 1]} : vector<8x256xf32> to vector<8x128xf32>
    %c6_96 = arith.constant 6 : index
    %c0_97 = arith.constant 0 : index
    %c0_98 = arith.constant 0 : index
    %192 = vector.load %arg3[%c6_96, %c0_97, %c0_98] : memref<8x8x128xf32, #tpu.memory_space<vmem>>, vector<1x8x128xf32>
    %193 = vector.shape_cast %192 : vector<1x8x128xf32> to vector<8x128xf32>
    %194 = arith.addf %191, %193 : vector<8x128xf32>
    %cst_99 = arith.constant 0.000000e+00 : f32
    %195 = vector.broadcast %cst_99 : f32 to vector<8x128xf32>
    %196 = arith.maximumf %194, %195 : vector<8x128xf32>
    %cst_100 = arith.constant dense<0.000000e+00> : vector<8x128xf32>
    %197 = tpu.matmul %196, %5, %cst_100 {dimension_numbers = #tpu.dot_dimension_numbers<[1], [0], [0], [1], [0, 0, 1, 1], [], []>} : vector<8x128xf32>, vector<128x128xf32>, vector<8x128xf32> -> vector<8x128xf32>
    %198 = arith.addf %197, %6 : vector<8x128xf32>
    %cst_101 = arith.constant 0.000000e+00 : f32
    %199 = vector.broadcast %cst_101 : f32 to vector<8x128xf32>
    %200 = arith.maximumf %198, %199 : vector<8x128xf32>
    %201 = math.tanh %200 : vector<8x128xf32>
    %cst_102 = arith.constant 1.000000e+00 : f32
    %202 = vector.broadcast %cst_102 : f32 to vector<8x128xf32>
    %203 = arith.subf %202, %190 : vector<8x128xf32>
    %204 = arith.mulf %203, %177 : vector<8x128xf32>
    %205 = arith.mulf %190, %201 : vector<8x128xf32>
    %206 = arith.addf %204, %205 : vector<8x128xf32>
    %c6_103 = arith.constant 6 : index
    %c0_104 = arith.constant 0 : index
    %c0_105 = arith.constant 0 : index
    %207 = vector.load %arg7[%c6_103, %c0_104, %c0_105] : memref<8x8x128xf32, #tpu.memory_space<vmem>>, vector<1x8x128xf32>
    %208 = vector.shape_cast %207 : vector<1x8x128xf32> to vector<8x128xf32>
    %209 = vector.shape_cast %206 : vector<8x128xf32> to vector<1x8x128xf32>
    tpu.vector_store %arg7[%c6_103, %c0_104, %c0_105], %209 {strides = array<i32>} : memref<8x8x128xf32, #tpu.memory_space<vmem>>, vector<1x8x128xf32>,
    %cst_106 = arith.constant dense<0.000000e+00> : vector<8x256xf32>
    %210 = tpu.matmul %206, %4, %cst_106 {dimension_numbers = #tpu.dot_dimension_numbers<[1], [0], [0], [1], [0, 0, 1, 1], [], []>} : vector<8x128xf32>, vector<128x256xf32>, vector<8x256xf32> -> vector<8x256xf32>
    %211 = vector.extract_strided_slice %210 {offsets = [0, 0], sizes = [8, 128], strides = [1, 1]} : vector<8x256xf32> to vector<8x128xf32>
    %c7 = arith.constant 7 : index
    %c0_107 = arith.constant 0 : index
    %c0_108 = arith.constant 0 : index
    %212 = vector.load %arg2[%c7, %c0_107, %c0_108] : memref<8x8x128xf32, #tpu.memory_space<vmem>>, vector<1x8x128xf32>
    %213 = vector.shape_cast %212 : vector<1x8x128xf32> to vector<8x128xf32>
    %214 = arith.addf %211, %213 : vector<8x128xf32>
    %215 = arith.negf %214 : vector<8x128xf32>
    %216 = math.exp %215 : vector<8x128xf32>
    %cst_109 = arith.constant 1.000000e+00 : f32
    %217 = vector.broadcast %cst_109 : f32 to vector<8x128xf32>
    %218 = arith.addf %217, %216 : vector<8x128xf32>
    %219 = arith.divf %217, %218 : vector<8x128xf32>
    %220 = vector.extract_strided_slice %210 {offsets = [0, 128], sizes = [8, 128], strides = [1, 1]} : vector<8x256xf32> to vector<8x128xf32>
    %c7_110 = arith.constant 7 : index
    %c0_111 = arith.constant 0 : index
    %c0_112 = arith.constant 0 : index
    %221 = vector.load %arg3[%c7_110, %c0_111, %c0_112] : memref<8x8x128xf32, #tpu.memory_space<vmem>>, vector<1x8x128xf32>
    %222 = vector.shape_cast %221 : vector<1x8x128xf32> to vector<8x128xf32>
    %223 = arith.addf %220, %222 : vector<8x128xf32>
    %cst_113 = arith.constant 0.000000e+00 : f32
    %224 = vector.broadcast %cst_113 : f32 to vector<8x128xf32>
    %225 = arith.maximumf %223, %224 : vector<8x128xf32>
    %cst_114 = arith.constant dense<0.000000e+00> : vector<8x128xf32>
    %226 = tpu.matmul %225, %5, %cst_114 {dimension_numbers = #tpu.dot_dimension_numbers<[1], [0], [0], [1], [0, 0, 1, 1], [], []>} : vector<8x128xf32>, vector<128x128xf32>, vector<8x128xf32> -> vector<8x128xf32>
    %227 = arith.addf %226, %6 : vector<8x128xf32>
    %cst_115 = arith.constant 0.000000e+00 : f32
    %228 = vector.broadcast %cst_115 : f32 to vector<8x128xf32>
    %229 = arith.maximumf %227, %228 : vector<8x128xf32>
    %230 = math.tanh %229 : vector<8x128xf32>
    %cst_116 = arith.constant 1.000000e+00 : f32
    %231 = vector.broadcast %cst_116 : f32 to vector<8x128xf32>
    %232 = arith.subf %231, %219 : vector<8x128xf32>
    %233 = arith.mulf %232, %206 : vector<8x128xf32>
    %234 = arith.mulf %219, %230 : vector<8x128xf32>
    %235 = arith.addf %233, %234 : vector<8x128xf32>
    %c7_117 = arith.constant 7 : index
    %c0_118 = arith.constant 0 : index
    %c0_119 = arith.constant 0 : index
    %236 = vector.load %arg7[%c7_117, %c0_118, %c0_119] : memref<8x8x128xf32, #tpu.memory_space<vmem>>, vector<1x8x128xf32>
    %237 = vector.shape_cast %236 : vector<1x8x128xf32> to vector<8x128xf32>
    %238 = vector.shape_cast %235 : vector<8x128xf32> to vector<1x8x128xf32>
    tpu.vector_store %arg7[%c7_117, %c0_118, %c0_119], %238 {strides = array<i32>} : memref<8x8x128xf32, #tpu.memory_space<vmem>>, vector<1x8x128xf32>,
    %c0_120 = arith.constant 0 : index
    %c0_121 = arith.constant 0 : index
    %239 = vector.load %arg8[%c0_120, %c0_121] : memref<8x128xf32, #tpu.memory_space<vmem>>, vector<8x128xf32>
    tpu.vector_store %arg8[%c0_120, %c0_121], %235 {strides = array<i32>} : memref<8x128xf32, #tpu.memory_space<vmem>>, vector<8x128xf32>,
    return
  }
  func.func @transform_0(%arg0: i32) -> (i32, i32) {
    %c0_i32 = arith.constant 0 : i32
    %c0_i32_0 = arith.constant 0 : i32
    %c0_i32_1 = arith.constant 0 : i32
    return %c0_i32, %c0_i32_0 : i32, i32
  }
  func.func @transform_1(%arg0: i32) -> (i32, i32, i32) {
    %c0_i32 = arith.constant 0 : i32
    %c0_i32_0 = arith.constant 0 : i32
    %c0_i32_1 = arith.constant 0 : i32
    return %arg0, %c0_i32, %c0_i32_0 : i32, i32, i32
  }
  func.func @transform_2(%arg0: i32) -> (i32, i32, i32) {
    %c0_i32 = arith.constant 0 : i32
    %c0_i32_0 = arith.constant 0 : i32
    %c0_i32_1 = arith.constant 0 : i32
    return %arg0, %c0_i32, %c0_i32_0 : i32, i32, i32
  }
  func.func @transform_3(%arg0: i32) -> (i32, i32) {
    %c0_i32 = arith.constant 0 : i32
    %c0_i32_0 = arith.constant 0 : i32
    %c0_i32_1 = arith.constant 0 : i32
    return %c0_i32, %c0_i32_0 : i32, i32
  }
  func.func @transform_4(%arg0: i32) -> (i32, i32) {
    %c0_i32 = arith.constant 0 : i32
    %c0_i32_0 = arith.constant 0 : i32
    %c0_i32_1 = arith.constant 0 : i32
    return %c0_i32, %c0_i32_0 : i32, i32
  }
  func.func @transform_5(%arg0: i32) -> (i32, i32) {
    %c0_i32 = arith.constant 0 : i32
    %c0_i32_0 = arith.constant 0 : i32
    %c0_i32_1 = arith.constant 0 : i32
    return %c0_i32, %c0_i32_0 : i32, i32
  }
  func.func @transform_6(%arg0: i32) -> (i32, i32, i32) {
    %c0_i32 = arith.constant 0 : i32
    %c0_i32_0 = arith.constant 0 : i32
    %c0_i32_1 = arith.constant 0 : i32
    return %arg0, %c0_i32, %c0_i32_0 : i32, i32, i32
  }
  func.func @transform_7(%arg0: i32) -> (i32, i32) {
    %c0_i32 = arith.constant 0 : i32
    %c0_i32_0 = arith.constant 0 : i32
    %c0_i32_1 = arith.constant 0 : i32
    return %c0_i32, %c0_i32_0 : i32, i32
  }
}

</mosaic_0001>

<bundles_post_ra>
// kernel: tpu_custom_call.1
= control target key start
LH: loop header
LB: loop body
LE: loop exit
PB: predicated region body
PF: predicated region fallthrough
CT: control target
= control target key end

     0   :  { %13 = vsyncpa [#allocation3], 0  ;;  %s3076_s0 = inlined_call_operand.hbm [shape: f32[8,128], index: 0, kind: input, shape index: {}]   ;;  %s3077_s1 = inlined_call_operand.hbm [shape: f32[8,8,128], index: 1, kind: input, shape index: {}]   ;;  %s3078_s2 = inlined_call_operand.hbm [shape: f32[8,8,128], index: 2, kind: input, shape index: {}]   ;;  %s3079_s3 = inlined_call_operand.hbm [shape: f32[128,256], index: 3, kind: input, shape index: {}]   ;;  %s3080_s4 = inlined_call_operand.hbm [shape: f32[128,128], index: 4, kind: input, shape index: {}]   ;;  %s3081_s5 = inlined_call_operand.vmem [shape: f32[8,128], index: 5, kind: input, shape index: {}]   ;;  %s3082_s6 = inlined_call_operand.hbm [shape: f32[8,8,128], index: 6, kind: output, shape index: {0}]   ;;  %s3083_s7 = inlined_call_operand.hbm [shape: f32[8,128], index: 7, kind: output, shape index: {1}]  }
   0x1   :  { %14 = vsyncpa [#allocation6], 0 }
   0x2   :  { %15 = vsyncpa [#allocation9], 0 }
   0x3   :  { %16 = vsyncpa [#allocation4], 0 }
   0x4   :  { %17 = vsyncpa [#allocation13], 0  ;;  %s2574_s24 = smov [#allocation5]   ;;  %s2410_s28 = scalar_lea.hbm %s3077_s1, 1024 }
   0x5   :  { %s33_s25 = sshll.u32 %s2574_s24, 4  ;;  %p2411_p0 = scmp.ne.s32.totalorder %s3077_s1, %s2410_s28  ;;  %s34_s25 = int_to_ptr.vmem [resolvable:$true] %s33_s25 }
   0x6   :  { %p2414_p1 = scmp.lt.u32.totalorder %s2410_s28, %s3077_s1 }
   0x8   :  { %p2416_p2 = pnand %p2414_p1, %p2411_p0 }
   0xa   :  { %2419 = shalt.err (!%p2416_p2)
}
   0xb   :  { %s2420_s10 = scalar_lea.vmem %s34_s25, 1024  ;;  %p2425_p4 = scmp.lt.s32.totalorder %s34_s25, %s34_s25 }
   0xc   :  { %p2421_p3 = scmp.ne.s32.totalorder %s34_s25, %s2420_s10  ;;  %p2426_p5 = scmp.lt.s32.totalorder %s2420_s10, %s2420_s10 }
   0xe   :  { %p2427_p6 = por %p2426_p5, %p2425_p4 }
  0x10   :  { %p2428_p7 = pnand %p2427_p6, %p2421_p3 }
  0x12   :  { %2431 = shalt.err (!%p2428_p7)
}
  0x13   :  { %s2575_s11 = smov 128   ;;  %s2576_s12 = smov 8  }
  0x14   :  { %39 = dma.hbm_to_vmem [thread:$0]  %s3077_s1, 1024, %s34_s25, [#allocation6], %s2575_s11, %s2575_s11, %s2576_s12  }
  0x15   :  { %s2577_s15 = smov [#allocation8]   ;;  %s2432_s19 = scalar_lea.hbm %s3079_s3, 4096 }
  0x16   :  { %s57_s16 = sshll.u32 %s2577_s15, 4  ;;  %p2433_p8 = scmp.ne.s32.totalorder %s3079_s3, %s2432_s19  ;;  %s58_s16 = int_to_ptr.vmem [resolvable:$true] %s57_s16 }
  0x17   :  { %p2436_p9 = scmp.lt.u32.totalorder %s2432_s19, %s3079_s3 }
  0x19   :  { %p2438_p10 = pnand %p2436_p9, %p2433_p8 }
  0x1b   :  { %2441 = shalt.err (!%p2438_p10)
}
  0x1c   :  { %s2442_s24 = scalar_lea.vmem %s58_s16, 4096  ;;  %p2447_p12 = scmp.lt.s32.totalorder %s58_s16, %s58_s16 }
  0x1d   :  { %p2443_p11 = scmp.ne.s32.totalorder %s58_s16, %s2442_s24  ;;  %p2448_p13 = scmp.lt.s32.totalorder %s2442_s24, %s2442_s24 }
  0x1f   :  { %p2449_p0 = por %p2448_p13, %p2447_p12 }
  0x21   :  { %p2450_p1 = pnand %p2449_p0, %p2443_p11 }
  0x23   :  { %2453 = shalt.err (!%p2450_p1)
}
  0x24   :  { %s2578_s1 = smov 256   ;;  %s2579_s25 = smov 16  }
  0x25   :  { %63 = dma.hbm_to_vmem [thread:$0]  %s3079_s3, 4096, %s58_s16, [#allocation9], %s2578_s1, %s2578_s1, %s2579_s25  }
  0x26   :  { %s2580_s28 = smov [#allocation2]   ;;  %s2581_s30 = smov [#allocation7]  }
  0x27   :  { %s24_s29 = sshll.u32 %s2580_s28, 4  ;;  %s45_s8 = sshll.u32 %s2581_s30, 4  ;;  %s25_s29 = int_to_ptr.vmem [resolvable:$true] %s24_s29  ;;  %s2655_s8 = int_to_ptr.vmem [resolvable:$true] %s45_s8 }
  0x28   :  { %s2454_s13 = scalar_lea.hbm %s3076_s0, 128 }
  0x29   :  { %p2455_p2 = scmp.ne.s32.totalorder %s3076_s0, %s2454_s13  ;;  %p2458_p3 = scmp.lt.u32.totalorder %s2454_s13, %s3076_s0 }
  0x2b   :  { %p2460_p4 = pnand %p2458_p3, %p2455_p2 }
  0x2d   :  { %2463 = shalt.err (!%p2460_p4)
}
  0x2e   :  { %s2464_s3 = scalar_lea.vmem %s25_s29, 128  ;;  %p2469_p6 = scmp.lt.s32.totalorder %s25_s29, %s25_s29 }
  0x2f   :  { %p2465_p5 = scmp.ne.s32.totalorder %s25_s29, %s2464_s3  ;;  %p2470_p7 = scmp.lt.s32.totalorder %s2464_s3, %s2464_s3 }
  0x31   :  { %p2471_p8 = por %p2470_p7, %p2469_p6 }
  0x33   :  { %p2472_p9 = pnand %p2471_p8, %p2465_p5 }
  0x35   :  { %2475 = shalt.err (!%p2472_p9)
}
  0x36   :  { %27 = dma.hbm_to_vmem [thread:$0]  %s3076_s0, 128, %s25_s29, [#allocation3]  }
  0x37   :  { %s2476_s22 = scalar_lea.hbm %s3078_s2, 1024 }
  0x38   :  { %p2477_p10 = scmp.ne.s32.totalorder %s3078_s2, %s2476_s22  ;;  %p2480_p11 = scmp.lt.u32.totalorder %s2476_s22, %s3078_s2 }
  0x3a   :  { %p2482_p12 = pnand %p2480_p11, %p2477_p10 }
  0x3c   :  { %2485 = shalt.err (!%p2482_p12)
}
  0x3d   :  { %s2486_s26 = scalar_lea.vmem %s2655_s8, 1024  ;;  %p2491_p0 = scmp.lt.s32.totalorder %s2655_s8, %s2655_s8 }
  0x3e   :  { %p2487_p13 = scmp.ne.s32.totalorder %s2655_s8, %s2486_s26  ;;  %p2492_p1 = scmp.lt.s32.totalorder %s2486_s26, %s2486_s26 }
  0x40   :  { %p2493_p2 = por %p2492_p1, %p2491_p0 }
  0x42   :  { %p2494_p3 = pnand %p2493_p2, %p2487_p13 }
  0x44   :  { %2497 = shalt.err (!%p2494_p3)
}
  0x45   :  { %51 = dma.hbm_to_vmem [thread:$0]  %s3078_s2, 1024, %s2655_s8, [#allocation6], %s2575_s11, %s2575_s11, %s2576_s12  }
  0x46   :  { %s2582_s28 = smov [#allocation10]   ;;  %s2498_s10 = scalar_lea.hbm %s3080_s4, 2048 }
  0x47   :  { %s69_s29 = sshll.u32 %s2582_s28, 4  ;;  %p2499_p4 = scmp.ne.s32.totalorder %s3080_s4, %s2498_s10  ;;  %s70_s29 = int_to_ptr.vmem [resolvable:$true] %s69_s29 }
  0x48   :  { %p2502_p5 = scmp.lt.u32.totalorder %s2498_s10, %s3080_s4 }
  0x4a   :  { %p2504_p6 = pnand %p2502_p5, %p2499_p4 }
  0x4c   :  { %2507 = shalt.err (!%p2504_p6)
}
  0x4d   :  { %s2508_s18 = scalar_lea.vmem %s70_s29, 2048  ;;  %p2513_p8 = scmp.lt.s32.totalorder %s70_s29, %s70_s29 }
  0x4e   :  { %p2509_p7 = scmp.ne.s32.totalorder %s70_s29, %s2508_s18  ;;  %p2514_p9 = scmp.lt.s32.totalorder %s2508_s18, %s2508_s18 }
  0x50   :  { %p2515_p10 = por %p2514_p9, %p2513_p8 }
  0x52   :  { %p2516_p11 = pnand %p2515_p10, %p2509_p7 }
  0x54   :  { %2519 = shalt.err (!%p2516_p11)
}
  0x55   :  { %75 = dma.hbm_to_vmem [thread:$0]  %s3080_s4, 2048, %s70_s29, [#allocation9], %s2575_s11, %s2575_s11, %s2576_s12  }
  0x56   :  { %2564 = dma.done.wait [#allocation3], 128  }
  0x57   :  { %2565 = vsyncadd [#allocation3], 4294967168 }
  0x58   :  { %2566 = dma.done.wait [#allocation6], 2048  }
  0x59   :  { %2567 = vsyncadd [#allocation6], 4294965248 }
  0x5a   :  { %2568 = dma.done.wait [#allocation9], 6144  }
  0x5b   :  { %2569 = vsyncadd [#allocation9], 4294961152  ;;  %v2583_v0 = vmov 0.0   ;;  %v2584_v1 = vmov 0.0|0.0   ;;  %v101_v2 = vld [vmem:[#allocation8 + $0x8] sm:$0xff]  ;;  %v103_v3 = vld [vmem:[#allocation8 + $0x18] sm:$0xff] }
  0x5c   :  { %213 = vmatprep.mubr.f32.mxu0 %v2583_v0  ;;  %1932 = vmatprep.subr.bf16.mxu1 %v2584_v1  ;;  %v100_v4 = vld [vmem:[#allocation8] sm:$0xff]  ;;  %v2706_v5 = vpack.c.bf16 %v103_v3, %v101_v2  ;;  %v102_v6 = vld [vmem:[#allocation8 + $0x10] sm:$0xff]  ;;  %v105_v7 = vld [vmem:[#allocation8 + $0x28] sm:$0xff]  ;;  %vm2585_vm0 = vmmov 0   ;;  %s2587_s19 = smov [#allocation12]  }
  0x5d   :  { %v107_v8 = vld [vmem:[#allocation8 + $0x38] sm:$0xff]  ;;  %v2708_v9 = vpack.c.bf16 %v102_v6, %v100_v4  ;;  %v104_v11 = vld [vmem:[#allocation8 + $0x20] sm:$0xff]  ;;  %v106_v12 = vld [vmem:[#allocation8 + $0x30] sm:$0xff]  ;;  %1652 = vmatprep.mubr.msk.f32.mxu1 %vm2585_vm0, %v2583_v0  ;;  %s1461_s20 = sshll.u32 %s2587_s19, 4  ;;  %s1462_s20 = int_to_ptr.vmem [resolvable:$true] %s1461_s20 }
  0x5e   :  { %v2710_v10 = vpack.c.bf16 %v107_v8, %v105_v7  ;;  %v109_v13 = vld [vmem:[#allocation8 + $0x48] sm:$0xff]  ;;  %1901 = vmatprep.subr.bf16.mxu0 %v2706_v5  ;;  %v111_v14 = vld [vmem:[#allocation8 + $0x58] sm:$0xff]  ;;  %v2714_v15 = vpack.c.bf16 %v106_v12, %v104_v11  ;;  %v108_v17 = vld [vmem:[#allocation8 + $0x40] sm:$0xff] }
  0x5f   :  { %1903 = vmatpush1.bf16.msra.mxu0 %v2708_v9  ;;  %v2717_v16 = vpack.c.bf16 %v111_v14, %v109_v13  ;;  %v110_v18 = vld [vmem:[#allocation8 + $0x50] sm:$0xff]  ;;  %v113_v19 = vld [vmem:[#allocation8 + $0x68] sm:$0xff]  ;;  %v115_v20 = vld [vmem:[#allocation8 + $0x78] sm:$0xff] }
  0x60   :  { %1905 = vmatprep.subr.bf16.mxu0 %v2710_v10  ;;  %v2720_v21 = vpack.c.bf16 %v110_v18, %v108_v17  ;;  %v2723_v22 = vpack.c.bf16 %v115_v20, %v113_v19  ;;  %v112_v23 = vld [vmem:[#allocation8 + $0x60] sm:$0xff]  ;;  %v114_v24 = vld [vmem:[#allocation8 + $0x70] sm:$0xff]  ;;  %v117_v25 = vld [vmem:[#allocation8 + $0x88] sm:$0xff] }
  0x61   :  { %v119_v26 = vld [vmem:[#allocation8 + $0x98] sm:$0xff]  ;;  %v132_v27 = vld [vmem:[#allocation10] sm:$0xff]  ;;  %v133_v28 = vld [vmem:[#allocation10 + $0x8] sm:$0xff]  ;;  %v2726_v30 = vpack.c.bf16 %v114_v24, %v112_v23 }
  0x62   :  { %v134_v29 = vld [vmem:[#allocation10 + $0x10] sm:$0xff]  ;;  %v2728_v31 = vpack.c.bf16 %v133_v28, %v132_v27  ;;  %v135_v32 = vld [vmem:[#allocation10 + $0x18] sm:$0xff]  ;;  %v2731_v33 = vpack.c.bf16 %v119_v26, %v117_v25  ;;  %v116_v34 = vld [vmem:[#allocation8 + $0x80] sm:$0xff] }
  0x63   :  { %1907 = vmatpush1.bf16.msra.mxu0 %v2714_v15  ;;  %v118_v35 = vld [vmem:[#allocation8 + $0x90] sm:$0xff]  ;;  %v121_v36 = vld [vmem:[#allocation8 + $0xa8] sm:$0xff]  ;;  %v123_v37 = vld [vmem:[#allocation8 + $0xb8] sm:$0xff]  ;;  %v2734_v38 = vpack.c.bf16 %v135_v32, %v134_v29 }
  0x64   :  { %1909 = vmatprep.subr.bf16.mxu0 %v2717_v16  ;;  %1934 = vmatpush3.bf16.msra.mxu1 %v2728_v31  ;;  %v136_v39 = vld [vmem:[#allocation10 + $0x20] sm:$0xff]  ;;  %v137_v40 = vld [vmem:[#allocation10 + $0x28] sm:$0xff]  ;;  %v2738_v41 = vpack.c.bf16 %v118_v35, %v116_v34  ;;  %v2741_v42 = vpack.c.bf16 %v123_v37, %v121_v36  ;;  %v122_v44 = vld [vmem:[#allocation8 + $0xb0] sm:$0xff] }
  0x65   :  { %1935 = vmatprep.subr.bf16.mxu1 %v2584_v1  ;;  %v120_v43 = vld [vmem:[#allocation8 + $0xa0] sm:$0xff]  ;;  %v125_v45 = vld [vmem:[#allocation8 + $0xc8] sm:$0xff]  ;;  %v127_v46 = vld [vmem:[#allocation8 + $0xd8] sm:$0xff]  ;;  %v2744_v47 = vpack.c.bf16 %v137_v40, %v136_v39 }
  0x66   :  { %v138_v48 = vld [vmem:[#allocation10 + $0x30] sm:$0xff]  ;;  %v139_v49 = vld [vmem:[#allocation10 + $0x38] sm:$0xff]  ;;  %v2748_v50 = vpack.c.bf16 %v122_v44, %v120_v43  ;;  %v2751_v51 = vpack.c.bf16 %v127_v46, %v125_v45  ;;  %v124_v52 = vld [vmem:[#allocation8 + $0xc0] sm:$0xff] }
  0x67   :  { %1911 = vmatpush1.bf16.msra.mxu0 %v2720_v21  ;;  %v126_v53 = vld [vmem:[#allocation8 + $0xd0] sm:$0xff]  ;;  %v129_v54 = vld [vmem:[#allocation8 + $0xe8] sm:$0xff]  ;;  %v131_v55 = vld [vmem:[#allocation8 + $0xf8] sm:$0xff]  ;;  %v2754_v56 = vpack.c.bf16 %v139_v49, %v138_v48 }
  0x68   :  { %1913 = vmatprep.subr.bf16.mxu0 %v2723_v22  ;;  %1937 = vmatpush3.bf16.msra.mxu1 %v2734_v38  ;;  %v140_v57 = vld [vmem:[#allocation10 + $0x40] sm:$0xff]  ;;  %v141_v58 = vld [vmem:[#allocation10 + $0x48] sm:$0xff]  ;;  %v2758_v59 = vpack.c.bf16 %v126_v53, %v124_v52  ;;  %v2761_v60 = vpack.c.bf16 %v131_v55, %v129_v54  ;;  %v130_v62 = vld [vmem:[#allocation8 + $0xf0] sm:$0xff] }
  0x69   :  { %1938 = vmatprep.subr.bf16.mxu1 %v2584_v1  ;;  %v128_v61 = vld [vmem:[#allocation8 + $0xe0] sm:$0xff]  ;;  %v2764_v63 = vpack.c.bf16 %v141_v58, %v140_v57  ;;  %v142_v2 = vld [vmem:[#allocation10 + $0x50] sm:$0xff]  ;;  %v143_v3 = vld [vmem:[#allocation10 + $0x58] sm:$0xff] }
  0x6a   :  { %v2768_v4 = vpack.c.bf16 %v130_v62, %v128_v61  ;;  %v2772_v6 = vpack.c.bf16 %v143_v3, %v142_v2  ;;  %v144_v7 = vld [vmem:[#allocation10 + $0x60] sm:$0xff]  ;;  %v145_v8 = vld [vmem:[#allocation10 + $0x68] sm:$0xff]  ;;  %v2776_v11 = vld [vmem:[#allocation2] sm:$0xff] }
  0x6b   :  { %1915 = vmatpush1.bf16.msra.mxu0 %v2726_v30  ;;  %v2780_v12 = vpack.c.bf16 %v145_v8, %v144_v7  ;;  %v146_v13 = vld [vmem:[#allocation10 + $0x70] sm:$0xff]  ;;  %v147_v14 = vld [vmem:[#allocation10 + $0x78] sm:$0xff]  ;;  %v228_v18 = vld [vmem:[#allocation7] sm:$0xff] }
  0x6c   :  { %1917 = vmatprep.subr.bf16.mxu0 %v2731_v33  ;;  %1940 = vmatpush3.bf16.msra.mxu1 %v2744_v47  ;;  %v2803_v17 = vpack.c.bf16 %v147_v14, %v146_v13  ;;  %v220_v25 = vld [vmem:[#allocation5] sm:$0xff]  ;;  %v2830_v32 = vld [vmem:[%s3081_s5] sm:$0xff]  ;;  %v389_v48 = vld [vmem:[#allocation7 + $0x8] sm:$0xff]  ;;  %s2586_s5 = smov [#allocation11]  }
  0x6d   :  { %1941 = vmatprep.subr.bf16.mxu1 %v2584_v1  ;;  %v380_v55 = vld [vmem:[#allocation5 + $0x8] sm:$0xff]  ;;  %s1448_s16 = sshll.u32 %s2586_s5, 4  ;;  %s1449_s16 = int_to_ptr.vmem [resolvable:$true] %s1448_s16 }
  0x6e   :  { %s2520_s21 = scalar_lea.vmem %s1449_s16, 1024  ;;  %p2525_p13 = scmp.lt.s32.totalorder %s1449_s16, %s1449_s16 }
  0x6f   :  { %1919 = vmatpush1.bf16.msra.mxu0 %v2738_v41  ;;  %p2521_p12 = scmp.ne.s32.totalorder %s1449_s16, %s2520_s21  ;;  %p2526_p0 = scmp.lt.s32.totalorder %s2520_s21, %s2520_s21 }
  0x70   :  { %1921 = vmatprep.subr.bf16.mxu0 %v2741_v42  ;;  %1943 = vmatpush3.bf16.msra.mxu1 %v2754_v56 }
  0x71   :  { %1944 = vmatprep.subr.bf16.mxu1 %v2584_v1  ;;  %p2527_p1 = por %p2526_p0, %p2525_p13 }
  0x73   :  { %1923 = vmatpush1.bf16.msra.mxu0 %v2748_v50  ;;  %p2528_p2 = pnand %p2527_p1, %p2521_p12 }
  0x74   :  { %1925 = vmatprep.subr.bf16.mxu0 %v2751_v51  ;;  %1946 = vmatpush3.bf16.msra.mxu1 %v2764_v63 }
  0x75   :  { %1947 = vmatprep.subr.bf16.mxu1 %v2584_v1 }
  0x77   :  { %1927 = vmatpush1.bf16.msra.mxu0 %v2758_v59 }
  0x78   :  { %1929 = vmatprep.subr.bf16.mxu0 %v2761_v60  ;;  %1949 = vmatpush3.bf16.msra.mxu1 %v2772_v6 }
  0x79   :  { %1950 = vmatprep.subr.bf16.mxu1 %v2584_v1 }
  0x7b   :  { %1931 = vmatpush1.bf16.msra.mxu0 %v2768_v4 }
  0x7c   :  { %1957 = vmatprep.subr.bf16.mxu0 %v2706_v5  ;;  %1952 = vmatpush3.bf16.msra.mxu1 %v2780_v12 }
  0x7d   :  { %1953 = vmatprep.subr.bf16.mxu1 %v2584_v1 }
  0x7e   :  { %214 = vmatmul.mubr.f32.vlgmr.msra.gmra.mrb[0].mxu0 %v2776_v11 }
  0x7f   :  { %1959 = vmatpush1.bf16.msra.mxu0 %v2708_v9  ;;  %372 = vmatprep.mubr.f32.mxu0 %v2583_v0 }
  0x80   :  { %1961 = vmatprep.subr.bf16.mxu0 %v2710_v10  ;;  %1955 = vmatpush3.bf16.msra.mxu1 %v2803_v17 }
  0x81   :  { %1988 = vmatprep.subr.bf16.mxu1 %v2584_v1 }
  0x83   :  { %1963 = vmatpush1.bf16.msra.mxu0 %v2714_v15 }
  0x84   :  { %1965 = vmatprep.subr.bf16.mxu0 %v2717_v16 }
  0x87   :  { %1967 = vmatpush1.bf16.msra.mxu0 %v2720_v21 }
  0x88   :  { %1969 = vmatprep.subr.bf16.mxu0 %v2723_v22 }
  0x8b   :  { %1971 = vmatpush1.bf16.msra.mxu0 %v2726_v30 }
  0x8c   :  { %1973 = vmatprep.subr.bf16.mxu0 %v2731_v33 }
  0x8f   :  { %1975 = vmatpush1.bf16.msra.mxu0 %v2738_v41 }
  0x90   :  { %1977 = vmatprep.subr.bf16.mxu0 %v2741_v42 }
  0x93   :  { %1979 = vmatpush1.bf16.msra.mxu0 %v2748_v50 }
  0x94   :  { %1981 = vmatprep.subr.bf16.mxu0 %v2751_v51 }
  0x97   :  { %1983 = vmatpush1.bf16.msra.mxu0 %v2758_v59 }
  0x98   :  { %1985 = vmatprep.subr.bf16.mxu0 %v2761_v60 }
  0x9b   :  { %1987 = vmatpush1.bf16.msra.mxu0 %v2768_v4 }
  0x9c   :  { %2013 = vmatprep.subr.bf16.mxu0 %v2706_v5 }
 0x151   :  { %v215_v19 = vpop.f32.mrb[0].mxu0 }
 0x152   :  { %v217_v20 = vpop.f32.mrb[1].mxu0  ;;  %v221_v26 = vadd.f32 %v220_v25, %v215_v19 }
 0x153   :  { %v229_v23 = vadd.f32 %v228_v18, %v217_v20 }
 0x154   :  { %v1476_v27 = vmul.f32 -1.442695, %v221_v26 }
 0x155   :  { %v230_v24 = vmax.f32 %v229_v23, 0.0  ;;  %v551_v23 = vld [vmem:[#allocation7 + $0x10] sm:$0xff] }
 0x156   :  { %2362 = vpow2.f32 %v1476_v27 }
 0x157   :  { %1653 = vmatmul.mubr.f32.vlgmr.msra.gmra.mrb[0].mxu1 %v230_v24 }
 0x158   :  { %1990 = vmatpush3.bf16.msra.mxu1 %v2728_v31  ;;  %1687 = vmatprep.mubr.msk.f32.mxu1 %vm2585_vm0, %v2583_v0 }
 0x159   :  { %1991 = vmatprep.subr.bf16.mxu1 %v2584_v1 }
 0x15c   :  { %1993 = vmatpush3.bf16.msra.mxu1 %v2734_v38 }
 0x15d   :  { %1994 = vmatprep.subr.bf16.mxu1 %v2584_v1 }
 0x160   :  { %1996 = vmatpush3.bf16.msra.mxu1 %v2744_v47  ;;  %v2363_v28 = vpop.eup %2362 }
 0x161   :  { %1997 = vmatprep.subr.bf16.mxu1 %v2584_v1  ;;  %v225_v29 = vadd.f32 1.0, %v2363_v28  ;;  %v542_v28 = vld [vmem:[#allocation5 + $0x10] sm:$0xff] }
 0x163   :  { %2364 = vrcp.f32 %v225_v29 }
 0x164   :  { %1999 = vmatpush3.bf16.msra.mxu1 %v2754_v56 }
 0x165   :  { %2000 = vmatprep.subr.bf16.mxu1 %v2584_v1 }
 0x168   :  { %2002 = vmatpush3.bf16.msra.mxu1 %v2764_v63 }
 0x169   :  { %2003 = vmatprep.subr.bf16.mxu1 %v2584_v1 }
 0x16c   :  { %2005 = vmatpush3.bf16.msra.mxu1 %v2772_v6 }
 0x16d   :  { %2006 = vmatprep.subr.bf16.mxu1 %v2584_v1  ;;  %v2365_v39 = vpop.eup %2364 }
 0x16e   :  { %v303_v40 = vsub.f32 1.0, %v2365_v39 }
 0x170   :  { %2008 = vmatpush3.bf16.msra.mxu1 %v2780_v12  ;;  %v304_v44 = vmul.f32 %v303_v40, %v2776_v11 }
 0x171   :  { %2009 = vmatprep.subr.bf16.mxu1 %v2584_v1 }
 0x174   :  { %2011 = vmatpush3.bf16.msra.mxu1 %v2803_v17 }
 0x175   :  { %2044 = vmatprep.subr.bf16.mxu1 %v2584_v1 }
 0x22a   :  { %v297_v34 = vpop.f32.mrb[0].mxu1 }
 0x22b   :  { %v298_v35 = vadd.f32 %v297_v34, %v2830_v32  ;;  %v1654_v36 = vpop.f32.mrb[1].mxu1 }
 0x22d   :  { %v301_v37 = vmax.f32 %v298_v35, 0.0 }
 0x22f   :  { %2366 = vtanh.f32 %v301_v37 }
 0x239   :  { %v2367_v43 = vpop.eup %2366 }
 0x23a   :  { %v305_v45 = vmul.f32 %v2367_v43, %v2365_v39 }
 0x23c   :  { %v306_v46 = vadd.f32 %v305_v45, %v304_v44 }
 0x23e   :  { %307 = vst [vmem:[#allocation11] sm:$0xff] %v306_v46  ;;  %373 = vmatmul.mubr.f32.vlgmr.msra.gmra.mrb[2].mxu0 %v306_v46 }
 0x23f   :  { %2015 = vmatpush1.bf16.msra.mxu0 %v2708_v9  ;;  %534 = vmatprep.mubr.f32.mxu0 %v2583_v0 }
 0x240   :  { %2017 = vmatprep.subr.bf16.mxu0 %v2710_v10 }
 0x243   :  { %2019 = vmatpush1.bf16.msra.mxu0 %v2714_v15 }
 0x244   :  { %2021 = vmatprep.subr.bf16.mxu0 %v2717_v16 }
 0x247   :  { %2023 = vmatpush1.bf16.msra.mxu0 %v2720_v21 }
 0x248   :  { %2025 = vmatprep.subr.bf16.mxu0 %v2723_v22 }
 0x24b   :  { %2027 = vmatpush1.bf16.msra.mxu0 %v2726_v30 }
 0x24c   :  { %2029 = vmatprep.subr.bf16.mxu0 %v2731_v33 }
 0x24f   :  { %2031 = vmatpush1.bf16.msra.mxu0 %v2738_v41 }
 0x250   :  { %2033 = vmatprep.subr.bf16.mxu0 %v2741_v42 }
 0x253   :  { %2035 = vmatpush1.bf16.msra.mxu0 %v2748_v50 }
 0x254   :  { %2037 = vmatprep.subr.bf16.mxu0 %v2751_v51 }
 0x257   :  { %2039 = vmatpush1.bf16.msra.mxu0 %v2758_v59 }
 0x258   :  { %2041 = vmatprep.subr.bf16.mxu0 %v2761_v60 }
 0x25b   :  { %2043 = vmatpush1.bf16.msra.mxu0 %v2768_v4 }
 0x25c   :  { %2069 = vmatprep.subr.bf16.mxu0 %v2706_v5 }
 0x311   :  { %v374_v49 = vpop.f32.mrb[2].mxu0 }
 0x312   :  { %v376_v52 = vpop.f32.mrb[3].mxu0  ;;  %v381_v57 = vadd.f32 %v380_v55, %v374_v49 }
 0x313   :  { %v390_v53 = vadd.f32 %v389_v48, %v376_v52 }
 0x314   :  { %v1477_v58 = vmul.f32 -1.442695, %v381_v57 }
 0x315   :  { %v391_v54 = vmax.f32 %v390_v53, 0.0  ;;  %v713_v53 = vld [vmem:[#allocation7 + $0x18] sm:$0xff] }
 0x316   :  { %2368 = vpow2.f32 %v1477_v58 }
 0x317   :  { %1688 = vmatmul.mubr.f32.vlgmr.msra.gmra.mrb[2].mxu1 %v391_v54 }
 0x318   :  { %2046 = vmatpush3.bf16.msra.mxu1 %v2728_v31  ;;  %1722 = vmatprep.mubr.msk.f32.mxu1 %vm2585_vm0, %v2583_v0 }
 0x319   :  { %2047 = vmatprep.subr.bf16.mxu1 %v2584_v1 }
 0x31c   :  { %2049 = vmatpush3.bf16.msra.mxu1 %v2734_v38 }
 0x31d   :  { %2050 = vmatprep.subr.bf16.mxu1 %v2584_v1 }
 0x320   :  { %2052 = vmatpush3.bf16.msra.mxu1 %v2744_v47  ;;  %v2369_v61 = vpop.eup %2368 }
 0x321   :  { %2053 = vmatprep.subr.bf16.mxu1 %v2584_v1  ;;  %v385_v62 = vadd.f32 1.0, %v2369_v61  ;;  %v704_v61 = vld [vmem:[#allocation5 + $0x18] sm:$0xff] }
 0x323   :  { %2370 = vrcp.f32 %v385_v62 }
 0x324   :  { %2055 = vmatpush3.bf16.msra.mxu1 %v2754_v56 }
 0x325   :  { %2056 = vmatprep.subr.bf16.mxu1 %v2584_v1 }
 0x328   :  { %2058 = vmatpush3.bf16.msra.mxu1 %v2764_v63 }
 0x329   :  { %2059 = vmatprep.subr.bf16.mxu1 %v2584_v1 }
 0x32c   :  { %2061 = vmatpush3.bf16.msra.mxu1 %v2772_v6 }
 0x32d   :  { %2062 = vmatprep.subr.bf16.mxu1 %v2584_v1  ;;  %v2371_v11 = vpop.eup %2370 }
 0x32e   :  { %v464_v13 = vsub.f32 1.0, %v2371_v11 }
 0x330   :  { %2064 = vmatpush3.bf16.msra.mxu1 %v2780_v12  ;;  %v465_v18 = vmul.f32 %v464_v13, %v306_v46 }
 0x331   :  { %2065 = vmatprep.subr.bf16.mxu1 %v2584_v1 }
 0x334   :  { %2067 = vmatpush3.bf16.msra.mxu1 %v2803_v17 }
 0x335   :  { %2100 = vmatprep.subr.bf16.mxu1 %v2584_v1 }
 0x3ea   :  { %v458_v2 = vpop.f32.mrb[2].mxu1 }
 0x3eb   :  { %v459_v3 = vadd.f32 %v458_v2, %v2830_v32  ;;  %v1689_v7 = vpop.f32.mrb[3].mxu1 }
 0x3ed   :  { %v462_v8 = vmax.f32 %v459_v3, 0.0 }
 0x3ef   :  { %2372 = vtanh.f32 %v462_v8 }
 0x3f9   :  { %v2373_v14 = vpop.eup %2372 }
 0x3fa   :  { %v466_v19 = vmul.f32 %v2373_v14, %v2371_v11 }
 0x3fc   :  { %v467_v20 = vadd.f32 %v466_v19, %v465_v18 }
 0x3fe   :  { %469 = vst [vmem:[#allocation11 + $0x8] sm:$0xff] %v467_v20  ;;  %535 = vmatmul.mubr.f32.vlgmr.msra.gmra.mrb[4].mxu0 %v467_v20 }
 0x3ff   :  { %2071 = vmatpush1.bf16.msra.mxu0 %v2708_v9  ;;  %696 = vmatprep.mubr.f32.mxu0 %v2583_v0 }
 0x400   :  { %2073 = vmatprep.subr.bf16.mxu0 %v2710_v10 }
 0x403   :  { %2075 = vmatpush1.bf16.msra.mxu0 %v2714_v15 }
 0x404   :  { %2077 = vmatprep.subr.bf16.mxu0 %v2717_v16 }
 0x407   :  { %2079 = vmatpush1.bf16.msra.mxu0 %v2720_v21 }
 0x408   :  { %2081 = vmatprep.subr.bf16.mxu0 %v2723_v22 }
 0x40b   :  { %2083 = vmatpush1.bf16.msra.mxu0 %v2726_v30 }
 0x40c   :  { %2085 = vmatprep.subr.bf16.mxu0 %v2731_v33 }
 0x40f   :  { %2087 = vmatpush1.bf16.msra.mxu0 %v2738_v41 }
 0x410   :  { %2089 = vmatprep.subr.bf16.mxu0 %v2741_v42 }
 0x413   :  { %2091 = vmatpush1.bf16.msra.mxu0 %v2748_v50 }
 0x414   :  { %2093 = vmatprep.subr.bf16.mxu0 %v2751_v51 }
 0x417   :  { %2095 = vmatpush1.bf16.msra.mxu0 %v2758_v59 }
 0x418   :  { %2097 = vmatprep.subr.bf16.mxu0 %v2761_v60 }
 0x41b   :  { %2099 = vmatpush1.bf16.msra.mxu0 %v2768_v4 }
 0x41c   :  { %2125 = vmatprep.subr.bf16.mxu0 %v2706_v5 }
 0x4d1   :  { %v536_v24 = vpop.f32.mrb[4].mxu0 }
 0x4d2   :  { %v538_v25 = vpop.f32.mrb[5].mxu0  ;;  %v543_v29 = vadd.f32 %v542_v28, %v536_v24 }
 0x4d3   :  { %v552_v26 = vadd.f32 %v551_v23, %v538_v25 }
 0x4d4   :  { %v1478_v34 = vmul.f32 -1.442695, %v543_v29 }
 0x4d5   :  { %v553_v27 = vmax.f32 %v552_v26, 0.0  ;;  %v875_v26 = vld [vmem:[#allocation7 + $0x20] sm:$0xff] }
 0x4d6   :  { %2374 = vpow2.f32 %v1478_v34 }
 0x4d7   :  { %1723 = vmatmul.mubr.f32.vlgmr.msra.gmra.mrb[4].mxu1 %v553_v27 }
 0x4d8   :  { %2102 = vmatpush3.bf16.msra.mxu1 %v2728_v31  ;;  %1757 = vmatprep.mubr.msk.f32.mxu1 %vm2585_vm0, %v2583_v0 }
 0x4d9   :  { %2103 = vmatprep.subr.bf16.mxu1 %v2584_v1 }
 0x4dc   :  { %2105 = vmatpush3.bf16.msra.mxu1 %v2734_v38 }
 0x4dd   :  { %2106 = vmatprep.subr.bf16.mxu1 %v2584_v1 }
 0x4e0   :  { %2108 = vmatpush3.bf16.msra.mxu1 %v2744_v47  ;;  %v2375_v35 = vpop.eup %2374 }
 0x4e1   :  { %2109 = vmatprep.subr.bf16.mxu1 %v2584_v1  ;;  %v547_v36 = vadd.f32 1.0, %v2375_v35  ;;  %v866_v35 = vld [vmem:[#allocation5 + $0x20] sm:$0xff] }
 0x4e3   :  { %2376 = vrcp.f32 %v547_v36 }
 0x4e4   :  { %2111 = vmatpush3.bf16.msra.mxu1 %v2754_v56 }
 0x4e5   :  { %2112 = vmatprep.subr.bf16.mxu1 %v2584_v1 }
 0x4e8   :  { %2114 = vmatpush3.bf16.msra.mxu1 %v2764_v63 }
 0x4e9   :  { %2115 = vmatprep.subr.bf16.mxu1 %v2584_v1 }
 0x4ec   :  { %2117 = vmatpush3.bf16.msra.mxu1 %v2772_v6 }
 0x4ed   :  { %2118 = vmatprep.subr.bf16.mxu1 %v2584_v1  ;;  %v2377_v44 = vpop.eup %2376 }
 0x4ee   :  { %v626_v45 = vsub.f32 1.0, %v2377_v44 }
 0x4f0   :  { %2120 = vmatpush3.bf16.msra.mxu1 %v2780_v12  ;;  %v627_v48 = vmul.f32 %v626_v45, %v467_v20 }
 0x4f1   :  { %2121 = vmatprep.subr.bf16.mxu1 %v2584_v1 }
 0x4f4   :  { %2123 = vmatpush3.bf16.msra.mxu1 %v2803_v17 }
 0x4f5   :  { %2156 = vmatprep.subr.bf16.mxu1 %v2584_v1 }
 0x5aa   :  { %v620_v37 = vpop.f32.mrb[4].mxu1 }
 0x5ab   :  { %v621_v39 = vadd.f32 %v620_v37, %v2830_v32  ;;  %v1724_v40 = vpop.f32.mrb[5].mxu1 }
 0x5ad   :  { %v624_v43 = vmax.f32 %v621_v39, 0.0 }
 0x5af   :  { %2378 = vtanh.f32 %v624_v43 }
 0x5b9   :  { %v2379_v46 = vpop.eup %2378 }
 0x5ba   :  { %v628_v49 = vmul.f32 %v2379_v46, %v2377_v44 }
 0x5bc   :  { %v629_v52 = vadd.f32 %v628_v49, %v627_v48 }
 0x5be   :  { %631 = vst [vmem:[#allocation11 + $0x10] sm:$0xff] %v629_v52  ;;  %697 = vmatmul.mubr.f32.vlgmr.msra.gmra.mrb[6].mxu0 %v629_v52 }
 0x5bf   :  { %2127 = vmatpush1.bf16.msra.mxu0 %v2708_v9  ;;  %858 = vmatprep.mubr.f32.mxu0 %v2583_v0 }
 0x5c0   :  { %2129 = vmatprep.subr.bf16.mxu0 %v2710_v10 }
 0x5c3   :  { %2131 = vmatpush1.bf16.msra.mxu0 %v2714_v15 }
 0x5c4   :  { %2133 = vmatprep.subr.bf16.mxu0 %v2717_v16 }
 0x5c7   :  { %2135 = vmatpush1.bf16.msra.mxu0 %v2720_v21 }
 0x5c8   :  { %2137 = vmatprep.subr.bf16.mxu0 %v2723_v22 }
 0x5cb   :  { %2139 = vmatpush1.bf16.msra.mxu0 %v2726_v30 }
 0x5cc   :  { %2141 = vmatprep.subr.bf16.mxu0 %v2731_v33 }
 0x5cf   :  { %2143 = vmatpush1.bf16.msra.mxu0 %v2738_v41 }
 0x5d0   :  { %2145 = vmatprep.subr.bf16.mxu0 %v2741_v42 }
 0x5d3   :  { %2147 = vmatpush1.bf16.msra.mxu0 %v2748_v50 }
 0x5d4   :  { %2149 = vmatprep.subr.bf16.mxu0 %v2751_v51 }
 0x5d7   :  { %2151 = vmatpush1.bf16.msra.mxu0 %v2758_v59 }
 0x5d8   :  { %2153 = vmatprep.subr.bf16.mxu0 %v2761_v60 }
 0x5db   :  { %2155 = vmatpush1.bf16.msra.mxu0 %v2768_v4 }
 0x5dc   :  { %2181 = vmatprep.subr.bf16.mxu0 %v2706_v5 }
 0x691   :  { %v698_v54 = vpop.f32.mrb[6].mxu0 }
 0x692   :  { %v700_v55 = vpop.f32.mrb[7].mxu0  ;;  %v705_v62 = vadd.f32 %v704_v61, %v698_v54 }
 0x693   :  { %v714_v57 = vadd.f32 %v713_v53, %v700_v55 }
 0x694   :  { %v1479_v2 = vmul.f32 -1.442695, %v705_v62 }
 0x695   :  { %v715_v58 = vmax.f32 %v714_v57, 0.0  ;;  %v1037_v57 = vld [vmem:[#allocation7 + $0x28] sm:$0xff] }
 0x696   :  { %2380 = vpow2.f32 %v1479_v2 }
 0x697   :  { %1758 = vmatmul.mubr.f32.vlgmr.msra.gmra.mrb[6].mxu1 %v715_v58 }
 0x698   :  { %2158 = vmatpush3.bf16.msra.mxu1 %v2728_v31  ;;  %1792 = vmatprep.mubr.msk.f32.mxu1 %vm2585_vm0, %v2583_v0 }
 0x699   :  { %2159 = vmatprep.subr.bf16.mxu1 %v2584_v1 }
 0x69c   :  { %2161 = vmatpush3.bf16.msra.mxu1 %v2734_v38 }
 0x69d   :  { %2162 = vmatprep.subr.bf16.mxu1 %v2584_v1 }
 0x6a0   :  { %2164 = vmatpush3.bf16.msra.mxu1 %v2744_v47  ;;  %v2381_v3 = vpop.eup %2380 }
 0x6a1   :  { %2165 = vmatprep.subr.bf16.mxu1 %v2584_v1  ;;  %v709_v7 = vadd.f32 1.0, %v2381_v3 }
 0x6a3   :  { %2382 = vrcp.f32 %v709_v7 }
 0x6a4   :  { %2167 = vmatpush3.bf16.msra.mxu1 %v2754_v56 }
 0x6a5   :  { %2168 = vmatprep.subr.bf16.mxu1 %v2584_v1 }
 0x6a8   :  { %2170 = vmatpush3.bf16.msra.mxu1 %v2764_v63 }
 0x6a9   :  { %2171 = vmatprep.subr.bf16.mxu1 %v2584_v1 }
 0x6ac   :  { %2173 = vmatpush3.bf16.msra.mxu1 %v2772_v6 }
 0x6ad   :  { %2174 = vmatprep.subr.bf16.mxu1 %v2584_v1  ;;  %v2383_v18 = vpop.eup %2382 }
 0x6ae   :  { %v788_v19 = vsub.f32 1.0, %v2383_v18 }
 0x6b0   :  { %2176 = vmatpush3.bf16.msra.mxu1 %v2780_v12  ;;  %v789_v23 = vmul.f32 %v788_v19, %v629_v52 }
 0x6b1   :  { %2177 = vmatprep.subr.bf16.mxu1 %v2584_v1 }
 0x6b4   :  { %2179 = vmatpush3.bf16.msra.mxu1 %v2803_v17 }
 0x6b5   :  { %2212 = vmatprep.subr.bf16.mxu1 %v2584_v1 }
 0x76a   :  { %v782_v8 = vpop.f32.mrb[6].mxu1 }
 0x76b   :  { %v783_v11 = vadd.f32 %v782_v8, %v2830_v32  ;;  %v1759_v13 = vpop.f32.mrb[7].mxu1 }
 0x76d   :  { %v786_v14 = vmax.f32 %v783_v11, 0.0 }
 0x76f   :  { %2384 = vtanh.f32 %v786_v14 }
 0x779   :  { %v2385_v20 = vpop.eup %2384 }
 0x77a   :  { %v790_v24 = vmul.f32 %v2385_v20, %v2383_v18 }
 0x77c   :  { %v791_v25 = vadd.f32 %v790_v24, %v789_v23 }
 0x77e   :  { %793 = vst [vmem:[#allocation11 + $0x18] sm:$0xff] %v791_v25  ;;  %859 = vmatmul.mubr.f32.vlgmr.msra.gmra.mrb[8].mxu0 %v791_v25 }
 0x77f   :  { %2183 = vmatpush1.bf16.msra.mxu0 %v2708_v9  ;;  %1020 = vmatprep.mubr.f32.mxu0 %v2583_v0 }
 0x780   :  { %2185 = vmatprep.subr.bf16.mxu0 %v2710_v10 }
 0x783   :  { %2187 = vmatpush1.bf16.msra.mxu0 %v2714_v15 }
 0x784   :  { %2189 = vmatprep.subr.bf16.mxu0 %v2717_v16 }
 0x787   :  { %2191 = vmatpush1.bf16.msra.mxu0 %v2720_v21 }
 0x788   :  { %2193 = vmatprep.subr.bf16.mxu0 %v2723_v22 }
 0x78b   :  { %2195 = vmatpush1.bf16.msra.mxu0 %v2726_v30 }
 0x78c   :  { %2197 = vmatprep.subr.bf16.mxu0 %v2731_v33 }
 0x78f   :  { %2199 = vmatpush1.bf16.msra.mxu0 %v2738_v41 }
 0x790   :  { %2201 = vmatprep.subr.bf16.mxu0 %v2741_v42 }
 0x793   :  { %2203 = vmatpush1.bf16.msra.mxu0 %v2748_v50 }
 0x794   :  { %2205 = vmatprep.subr.bf16.mxu0 %v2751_v51 }
 0x797   :  { %2207 = vmatpush1.bf16.msra.mxu0 %v2758_v59 }
 0x798   :  { %2209 = vmatprep.subr.bf16.mxu0 %v2761_v60 }
 0x79b   :  { %2211 = vmatpush1.bf16.msra.mxu0 %v2768_v4 }
 0x79c   :  { %2237 = vmatprep.subr.bf16.mxu0 %v2706_v5 }
 0x851   :  { %v860_v27 = vpop.f32.mrb[8].mxu0 }
 0x852   :  { %v862_v28 = vpop.f32.mrb[9].mxu0  ;;  %v867_v36 = vadd.f32 %v866_v35, %v860_v27 }
 0x853   :  { %v876_v29 = vadd.f32 %v875_v26, %v862_v28  ;;  %v1352_v28 = vld [vmem:[#allocation5 + $0x38] sm:$0xff] }
 0x854   :  { %v1480_v37 = vmul.f32 -1.442695, %v867_v36 }
 0x855   :  { %v877_v34 = vmax.f32 %v876_v29, 0.0 }
 0x856   :  { %2386 = vpow2.f32 %v1480_v37 }
 0x857   :  { %1793 = vmatmul.mubr.f32.vlgmr.msra.gmra.mrb[8].mxu1 %v877_v34 }
 0x858   :  { %2214 = vmatpush3.bf16.msra.mxu1 %v2728_v31  ;;  %1827 = vmatprep.mubr.msk.f32.mxu1 %vm2585_vm0, %v2583_v0 }
 0x859   :  { %2215 = vmatprep.subr.bf16.mxu1 %v2584_v1 }
 0x85c   :  { %2217 = vmatpush3.bf16.msra.mxu1 %v2734_v38 }
 0x85d   :  { %2218 = vmatprep.subr.bf16.mxu1 %v2584_v1 }
 0x860   :  { %2220 = vmatpush3.bf16.msra.mxu1 %v2744_v47  ;;  %v2387_v39 = vpop.eup %2386 }
 0x861   :  { %2221 = vmatprep.subr.bf16.mxu1 %v2584_v1  ;;  %v871_v40 = vadd.f32 1.0, %v2387_v39 }
 0x863   :  { %2388 = vrcp.f32 %v871_v40 }
 0x864   :  { %2223 = vmatpush3.bf16.msra.mxu1 %v2754_v56 }
 0x865   :  { %2224 = vmatprep.subr.bf16.mxu1 %v2584_v1 }
 0x868   :  { %2226 = vmatpush3.bf16.msra.mxu1 %v2764_v63 }
 0x869   :  { %2227 = vmatprep.subr.bf16.mxu1 %v2584_v1 }
 0x86c   :  { %2229 = vmatpush3.bf16.msra.mxu1 %v2772_v6 }
 0x86d   :  { %2230 = vmatprep.subr.bf16.mxu1 %v2584_v1  ;;  %v2389_v48 = vpop.eup %2388 }
 0x86e   :  { %v950_v49 = vsub.f32 1.0, %v2389_v48 }
 0x870   :  { %2232 = vmatpush3.bf16.msra.mxu1 %v2780_v12  ;;  %v951_v53 = vmul.f32 %v950_v49, %v791_v25 }
 0x871   :  { %2233 = vmatprep.subr.bf16.mxu1 %v2584_v1 }
 0x874   :  { %2235 = vmatpush3.bf16.msra.mxu1 %v2803_v17 }
 0x875   :  { %2268 = vmatprep.subr.bf16.mxu1 %v2584_v1 }
 0x92a   :  { %v944_v43 = vpop.f32.mrb[8].mxu1 }
 0x92b   :  { %v945_v44 = vadd.f32 %v944_v43, %v2830_v32  ;;  %v1794_v45 = vpop.f32.mrb[9].mxu1 }
 0x92d   :  { %v948_v46 = vmax.f32 %v945_v44, 0.0 }
 0x92f   :  { %2390 = vtanh.f32 %v948_v46 }
 0x939   :  { %v2391_v52 = vpop.eup %2390 }
 0x93a   :  { %v952_v54 = vmul.f32 %v2391_v52, %v2389_v48 }
 0x93c   :  { %v953_v55 = vadd.f32 %v952_v54, %v951_v53 }
 0x93e   :  { %955 = vst [vmem:[#allocation11 + $0x20] sm:$0xff] %v953_v55  ;;  %1021 = vmatmul.mubr.f32.vlgmr.msra.gmra.mrb[10].mxu0 %v953_v55 }
 0x93f   :  { %2239 = vmatpush1.bf16.msra.mxu0 %v2708_v9  ;;  %1182 = vmatprep.mubr.f32.mxu0 %v2583_v0 }
 0x940   :  { %2241 = vmatprep.subr.bf16.mxu0 %v2710_v10 }
 0x943   :  { %2243 = vmatpush1.bf16.msra.mxu0 %v2714_v15 }
 0x944   :  { %2245 = vmatprep.subr.bf16.mxu0 %v2717_v16 }
 0x947   :  { %2247 = vmatpush1.bf16.msra.mxu0 %v2720_v21 }
 0x948   :  { %2249 = vmatprep.subr.bf16.mxu0 %v2723_v22 }
 0x94b   :  { %2251 = vmatpush1.bf16.msra.mxu0 %v2726_v30 }
 0x94c   :  { %2253 = vmatprep.subr.bf16.mxu0 %v2731_v33 }
 0x94f   :  { %2255 = vmatpush1.bf16.msra.mxu0 %v2738_v41 }
 0x950   :  { %2257 = vmatprep.subr.bf16.mxu0 %v2741_v42 }
 0x953   :  { %2259 = vmatpush1.bf16.msra.mxu0 %v2748_v50 }
 0x954   :  { %2261 = vmatprep.subr.bf16.mxu0 %v2751_v51 }
 0x957   :  { %2263 = vmatpush1.bf16.msra.mxu0 %v2758_v59 }
 0x958   :  { %2265 = vmatprep.subr.bf16.mxu0 %v2761_v60 }
 0x95b   :  { %2267 = vmatpush1.bf16.msra.mxu0 %v2768_v4 }
 0x95c   :  { %2293 = vmatprep.subr.bf16.mxu0 %v2706_v5  ;;  %v1028_v5 = vld [vmem:[#allocation5 + $0x28] sm:$0xff] }
 0xa11   :  { %v1022_v58 = vpop.f32.mrb[10].mxu0 }
 0xa12   :  { %v1024_v61 = vpop.f32.mrb[11].mxu0  ;;  %v1029_v3 = vadd.f32 %v1028_v5, %v1022_v58 }
 0xa13   :  { %v1038_v62 = vadd.f32 %v1037_v57, %v1024_v61 }
 0xa14   :  { %v1481_v7 = vmul.f32 -1.442695, %v1029_v3 }
 0xa15   :  { %v1039_v2 = vmax.f32 %v1038_v62, 0.0 }
 0xa16   :  { %2392 = vpow2.f32 %v1481_v7 }
 0xa17   :  { %1828 = vmatmul.mubr.f32.vlgmr.msra.gmra.mrb[10].mxu1 %v1039_v2 }
 0xa18   :  { %2270 = vmatpush3.bf16.msra.mxu1 %v2728_v31  ;;  %1862 = vmatprep.mubr.msk.f32.mxu1 %vm2585_vm0, %v2583_v0 }
 0xa19   :  { %2271 = vmatprep.subr.bf16.mxu1 %v2584_v1 }
 0xa1c   :  { %2273 = vmatpush3.bf16.msra.mxu1 %v2734_v38 }
 0xa1d   :  { %2274 = vmatprep.subr.bf16.mxu1 %v2584_v1 }
 0xa20   :  { %2276 = vmatpush3.bf16.msra.mxu1 %v2744_v47  ;;  %v2393_v8 = vpop.eup %2392 }
 0xa21   :  { %2277 = vmatprep.subr.bf16.mxu1 %v2584_v1  ;;  %v1033_v11 = vadd.f32 1.0, %v2393_v8 }
 0xa23   :  { %2394 = vrcp.f32 %v1033_v11 }
 0xa24   :  { %2279 = vmatpush3.bf16.msra.mxu1 %v2754_v56 }
 0xa25   :  { %2280 = vmatprep.subr.bf16.mxu1 %v2584_v1 }
 0xa28   :  { %2282 = vmatpush3.bf16.msra.mxu1 %v2764_v63 }
 0xa29   :  { %2283 = vmatprep.subr.bf16.mxu1 %v2584_v1 }
 0xa2c   :  { %2285 = vmatpush3.bf16.msra.mxu1 %v2772_v6 }
 0xa2d   :  { %2286 = vmatprep.subr.bf16.mxu1 %v2584_v1  ;;  %v2395_v20 = vpop.eup %2394 }
 0xa2e   :  { %v1112_v23 = vsub.f32 1.0, %v2395_v20 }
 0xa30   :  { %2288 = vmatpush3.bf16.msra.mxu1 %v2780_v12  ;;  %v1113_v25 = vmul.f32 %v1112_v23, %v953_v55 }
 0xa31   :  { %2289 = vmatprep.subr.bf16.mxu1 %v2584_v1 }
 0xa34   :  { %2291 = vmatpush3.bf16.msra.mxu1 %v2803_v17 }
 0xa35   :  { %2324 = vmatprep.subr.bf16.mxu1 %v2584_v1 }
 0xaea   :  { %v1106_v13 = vpop.f32.mrb[10].mxu1 }
 0xaeb   :  { %v1107_v14 = vadd.f32 %v1106_v13, %v2830_v32  ;;  %v1829_v18 = vpop.f32.mrb[11].mxu1 }
 0xaed   :  { %v1110_v19 = vmax.f32 %v1107_v14, 0.0 }
 0xaef   :  { %2396 = vtanh.f32 %v1110_v19 }
 0xaf9   :  { %v2397_v24 = vpop.eup %2396 }
 0xafa   :  { %v1114_v26 = vmul.f32 %v2397_v24, %v2395_v20 }
 0xafc   :  { %v1115_v27 = vadd.f32 %v1114_v26, %v1113_v25 }
 0xafe   :  { %1117 = vst [vmem:[#allocation11 + $0x28] sm:$0xff] %v1115_v27  ;;  %1183 = vmatmul.mubr.f32.vlgmr.msra.gmra.mrb[12].mxu0 %v1115_v27 }
 0xaff   :  { %2295 = vmatpush1.bf16.msra.mxu0 %v2708_v9  ;;  %1344 = vmatprep.mubr.f32.mxu0 %v2583_v0  ;;  %v1199_v9 = vld [vmem:[#allocation7 + $0x30] sm:$0xff] }
 0xb00   :  { %2297 = vmatprep.subr.bf16.mxu0 %v2710_v10 }
 0xb03   :  { %2299 = vmatpush1.bf16.msra.mxu0 %v2714_v15 }
 0xb04   :  { %2301 = vmatprep.subr.bf16.mxu0 %v2717_v16 }
 0xb07   :  { %2303 = vmatpush1.bf16.msra.mxu0 %v2720_v21 }
 0xb08   :  { %2305 = vmatprep.subr.bf16.mxu0 %v2723_v22 }
 0xb0b   :  { %2307 = vmatpush1.bf16.msra.mxu0 %v2726_v30 }
 0xb0c   :  { %2309 = vmatprep.subr.bf16.mxu0 %v2731_v33 }
 0xb0f   :  { %2311 = vmatpush1.bf16.msra.mxu0 %v2738_v41 }
 0xb10   :  { %2313 = vmatprep.subr.bf16.mxu0 %v2741_v42 }
 0xb13   :  { %2315 = vmatpush1.bf16.msra.mxu0 %v2748_v50 }
 0xb14   :  { %2317 = vmatprep.subr.bf16.mxu0 %v2751_v51 }
 0xb17   :  { %2319 = vmatpush1.bf16.msra.mxu0 %v2758_v59 }
 0xb18   :  { %2321 = vmatprep.subr.bf16.mxu0 %v2761_v60 }
 0xb1b   :  { %2323 = vmatpush1.bf16.msra.mxu0 %v2768_v4 }
 0xbd1   :  { %v1184_v10 = vpop.f32.mrb[12].mxu0 }
 0xbd2   :  { %v1186_v15 = vpop.f32.mrb[13].mxu0 }
 0xbd3   :  { %v1200_v16 = vadd.f32 %v1199_v9, %v1186_v15 }
 0xbd5   :  { %v1201_v21 = vmax.f32 %v1200_v16, 0.0 }
 0xbd7   :  { %1863 = vmatmul.mubr.f32.vlgmr.msra.gmra.mrb[12].mxu1 %v1201_v21 }
 0xbd8   :  { %2326 = vmatpush3.bf16.msra.mxu1 %v2728_v31  ;;  %1897 = vmatprep.mubr.msk.f32.mxu1 %vm2585_vm0, %v2583_v0  ;;  %v1190_v0 = vld [vmem:[#allocation5 + $0x30] sm:$0xff] }
 0xbd9   :  { %2327 = vmatprep.subr.bf16.mxu1 %v2584_v1  ;;  %v1191_v22 = vadd.f32 %v1190_v0, %v1184_v10 }
 0xbdb   :  { %v1482_v30 = vmul.f32 -1.442695, %v1191_v22 }
 0xbdc   :  { %2329 = vmatpush3.bf16.msra.mxu1 %v2734_v38 }
 0xbdd   :  { %2330 = vmatprep.subr.bf16.mxu1 %v2584_v1  ;;  %2398 = vpow2.f32 %v1482_v30 }
 0xbe0   :  { %2332 = vmatpush3.bf16.msra.mxu1 %v2744_v47 }
 0xbe1   :  { %2333 = vmatprep.subr.bf16.mxu1 %v2584_v1 }
 0xbe4   :  { %2335 = vmatpush3.bf16.msra.mxu1 %v2754_v56 }
 0xbe5   :  { %2336 = vmatprep.subr.bf16.mxu1 %v2584_v1 }
 0xbe7   :  { %v2399_v31 = vpop.eup %2398 }
 0xbe8   :  { %2338 = vmatpush3.bf16.msra.mxu1 %v2764_v63  ;;  %v1195_v33 = vadd.f32 1.0, %v2399_v31  ;;  %v1361_v63 = vld [vmem:[#allocation7 + $0x38] sm:$0xff] }
 0xbe9   :  { %2339 = vmatprep.subr.bf16.mxu1 %v2584_v1 }
 0xbea   :  { %2400 = vrcp.f32 %v1195_v33 }
 0xbec   :  { %2341 = vmatpush3.bf16.msra.mxu1 %v2772_v6 }
 0xbed   :  { %2342 = vmatprep.subr.bf16.mxu1 %v2584_v1 }
 0xbf0   :  { %2344 = vmatpush3.bf16.msra.mxu1 %v2780_v12 }
 0xbf1   :  { %2345 = vmatprep.subr.bf16.mxu1 %v2584_v1 }
 0xbf4   :  { %2347 = vmatpush3.bf16.msra.mxu1 %v2803_v17  ;;  %v2401_v50 = vpop.eup %2400 }
 0xbf5   :  { %v1274_v51 = vsub.f32 1.0, %v2401_v50 }
 0xbf7   :  { %v1275_v59 = vmul.f32 %v1274_v51, %v1115_v27 }
 0xcaa   :  { %v1268_v38 = vpop.f32.mrb[12].mxu1 }
 0xcab   :  { %v1269_v41 = vadd.f32 %v1268_v38, %v2830_v32  ;;  %v1864_v42 = vpop.f32.mrb[13].mxu1 }
 0xcad   :  { %v1272_v47 = vmax.f32 %v1269_v41, 0.0 }
 0xcaf   :  { %2402 = vtanh.f32 %v1272_v47 }
 0xcb9   :  { %v2403_v56 = vpop.eup %2402 }
 0xcba   :  { %v1276_v1 = vmul.f32 %v2403_v56, %v2401_v50 }
 0xcbc   :  { %v1277_v60 = vadd.f32 %v1276_v1, %v1275_v59 }
 0xcbe   :  { %1279 = vst [vmem:[#allocation11 + $0x30] sm:$0xff] %v1277_v60  ;;  %1345 = vmatmul.mubr.f32.vlgmr.msra.gmra.mrb[14].mxu0 %v1277_v60 }
 0xd91   :  { %v1346_v4 = vpop.f32.mrb[14].mxu0 }
 0xd92   :  { %v1348_v6 = vpop.f32.mrb[15].mxu0  ;;  %v1353_v29 = vadd.f32 %v1352_v28, %v1346_v4 }
 0xd93   :  { %v1362_v12 = vadd.f32 %v1361_v63, %v1348_v6 }
 0xd94   :  { %v1483_v34 = vmul.f32 -1.442695, %v1353_v29 }
 0xd95   :  { %v1363_v17 = vmax.f32 %v1362_v12, 0.0 }
 0xd96   :  { %2404 = vpow2.f32 %v1483_v34 }
 0xd97   :  { %1898 = vmatmul.mubr.f32.vlgmr.msra.gmra.mrb[14].mxu1 %v1363_v17 }
 0xda0   :  { %v2405_v35 = vpop.eup %2404 }
 0xda1   :  { %v1357_v36 = vadd.f32 1.0, %v2405_v35 }
 0xda3   :  { %2406 = vrcp.f32 %v1357_v36 }
 0xdad   :  { %v2407_v44 = vpop.eup %2406 }
 0xdae   :  { %v1436_v45 = vsub.f32 1.0, %v2407_v44 }
 0xdb0   :  { %v1437_v48 = vmul.f32 %v1436_v45, %v1277_v60 }
 0xe6a   :  { %v1430_v37 = vpop.f32.mrb[14].mxu1 }
 0xe6b   :  { %v1431_v39 = vadd.f32 %v1430_v37, %v2830_v32  ;;  %v1899_v40 = vpop.f32.mrb[15].mxu1 }
 0xe6d   :  { %v1434_v43 = vmax.f32 %v1431_v39, 0.0 }
 0xe6f   :  { %2408 = vtanh.f32 %v1434_v43 }
 0xe79   :  { %v2409_v46 = vpop.eup %2408 }
 0xe7a   :  { %v1438_v49 = vmul.f32 %v2409_v46, %v2407_v44 }
 0xe7c   :  { %v1439_v52 = vadd.f32 %v1438_v49, %v1437_v48 }
 0xe7e   :  { %1441 = vst [vmem:[#allocation11 + $0x38] sm:$0xff] %v1439_v52  ;;  %1442 = vst [vmem:[#allocation12] sm:$0xff] %v1439_v52 }
 0xe7f   :  { %2531 = shalt.err (!%p2528_p2)
}
 0xe80   :  { %s2532_s24 = scalar_lea.hbm %s3082_s6, 1024 }
 0xe81   :  { %p2533_p3 = scmp.ne.s32.totalorder %s3082_s6, %s2532_s24  ;;  %p2536_p4 = scmp.lt.u32.totalorder %s2532_s24, %s3082_s6 }
 0xe83   :  { %p2538_p5 = pnand %p2536_p4, %p2533_p3 }
 0xe85   :  { %2541 = shalt.err (!%p2538_p5)
}
 0xe86   :  { %1454 = dma.vmem_to_hbm [thread:$0]  %s1449_s16, 1024, %s3082_s6, [#allocation4], %s2575_s11, %s2575_s11, %s2576_s12  }
 0xe87   :  { %s2542_s29 = scalar_lea.vmem %s1462_s20, 128  ;;  %p2547_p7 = scmp.lt.s32.totalorder %s1462_s20, %s1462_s20 }
 0xe88   :  { %p2543_p6 = scmp.ne.s32.totalorder %s1462_s20, %s2542_s29  ;;  %p2548_p8 = scmp.lt.s32.totalorder %s2542_s29, %s2542_s29 }
 0xe8a   :  { %p2549_p9 = por %p2548_p8, %p2547_p7 }
 0xe8c   :  { %p2550_p10 = pnand %p2549_p9, %p2543_p6 }
 0xe8e   :  { %2553 = shalt.err (!%p2550_p10)
}
 0xe8f   :  { %s2554_s10 = scalar_lea.hbm %s3083_s7, 128 }
 0xe90   :  { %p2555_p11 = scmp.ne.s32.totalorder %s3083_s7, %s2554_s10  ;;  %p2558_p12 = scmp.lt.u32.totalorder %s2554_s10, %s3083_s7 }
 0xe92   :  { %p2560_p13 = pnand %p2558_p12, %p2555_p11 }
 0xe94   :  { %2563 = shalt.err (!%p2560_p13)
}
 0xe95   :  { %1464 = dma.vmem_to_hbm [thread:$0]  %s1462_s20, 128, %s3083_s7, [#allocation13]  }
 0xe96   :  { %2570 = dma.done.wait [#allocation4], 1024  }
 0xe97   :  { %2571 = vsyncadd [#allocation4], 4294966272 }
 0xe98   :  { %2572 = dma.done.wait [#allocation13], 128  }
 0xe99   :  { %2573 = vsyncadd [#allocation13], 4294967168 }
 0xe9a   :  { %1471 = vsyncpa [#allocation3], 1 }
 0xe9b   :  { %1472 = vsyncpa [#allocation6], 1 }
 0xe9c   :  { %1473 = vsyncpa [#allocation9], 1 }
 0xe9d   :  { %1474 = vsyncpa [#allocation4], 1 }
 0xe9e   :  { %1475 = vsyncpa [#allocation13], 1 }

</bundles_post_ra>
